<compile_context>
chip_gen: v6e
topology: v6e:2x2x1
jax: 0.10.0
libtpu: 0.0.40
codegen_flags: <defaults>
</compile_context>

<pallas_src>
import functools
import math

import jax
import jax.numpy as jnp
from jax.experimental import pallas as pl
from jax.experimental.pallas import tpu as pltpu

OUTPUT_WINDOW = 12
NHEAD = 4
LN_EPS = 1e-5


def _layer_norm(x, gamma, beta):
    mean = jnp.mean(x, axis=-1, keepdims=True)
    var = jnp.mean((x - mean) ** 2, axis=-1, keepdims=True)
    return (x - mean) * jax.lax.rsqrt(var + LN_EPS) * gamma + beta


def transam_kernel(x_ref, pe_ref, mask_ref,
                   wqkv_ref, bqkv_ref, wo_ref, bo_ref,
                   g1_ref, be1_ref,
                   w1_ref, bf1_ref, w2_ref, bf2_ref,
                   g2_ref, be2_ref,
                   wdec_ref, bdec_ref,
                   out_ref, *, H):
    S, D = x_ref.shape
    Dh = D // H
    scale = 1.0 / math.sqrt(Dh)

    # positional encoding: shared (S, D) table, added per batch element
    x = x_ref[...] + pe_ref[...]                                        # (S, D) f32
    xb = x.astype(jnp.bfloat16)

    # fused QKV projection (bf16 operands, f32 accumulation on the MXU)
    qkv = jnp.dot(xb, wqkv_ref[...],
                  preferred_element_type=jnp.float32) + bqkv_ref[...]   # (S, 3D) f32

    # 128-lane-aligned Q/K/V slices -> head-major (H, S, Dh)
    q = qkv[:, 0:D].reshape(S, H, Dh)
    k = qkv[:, D:2 * D].reshape(S, H, Dh)
    v = qkv[:, 2 * D:3 * D].reshape(S, H, Dh)
    qh = jnp.transpose(q, (1, 0, 2))                                    # (H, S, Dh)
    kh = jnp.transpose(k, (1, 0, 2))
    vh = jnp.transpose(v, (1, 0, 2))

    # head-batched attention: one scores einsum + one PV einsum
    s = jnp.einsum('hqd,hkd->hqk', qh, kh,
                   preferred_element_type=jnp.float32) * scale          # (H, S, S)
    s = s + mask_ref[...][None, :, :]                                   # causal mask
    s = s - jnp.max(s, axis=-1, keepdims=True)
    p = jnp.exp(s)
    p = p * pl.reciprocal(jnp.sum(p, axis=-1, keepdims=True), approx=True)
    ctx = jnp.einsum('hqk,hkd->hqd', p.astype(jnp.bfloat16),
                     vh.astype(jnp.bfloat16),
                     preferred_element_type=jnp.float32)                # (H, S, Dh)
    ctx = jnp.transpose(ctx, (1, 0, 2)).reshape(S, D)                   # (S, D)

    # attention output projection + residual + LayerNorm1
    attn = jnp.dot(ctx.astype(jnp.bfloat16), wo_ref[...],
                   preferred_element_type=jnp.float32) + bo_ref[...]
    h1 = _layer_norm(x + attn, g1_ref[...], be1_ref[...])

    # feed-forward (relu) + residual + LayerNorm2
    ff = jnp.dot(h1.astype(jnp.bfloat16), w1_ref[...],
                 preferred_element_type=jnp.float32) + bf1_ref[...]
    ff = jnp.maximum(ff, 0.0)
    ff = jnp.dot(ff.astype(jnp.bfloat16), w2_ref[...],
                 preferred_element_type=jnp.float32) + bf2_ref[...]
    h2 = _layer_norm(h1 + ff, g2_ref[...], be2_ref[...])

    # decoder over all S rows; last position extracted by the wrapper
    out_ref[...] = (jnp.dot(h2.astype(jnp.bfloat16), wdec_ref[...],
                            preferred_element_type=jnp.float32) + bdec_ref[...])


def make_positional_encoding(seq_len, d_model):
    position = jnp.arange(seq_len, dtype=jnp.float32)[:, None]
    div_term = jnp.exp(jnp.arange(0, d_model, 2, dtype=jnp.float32)
                       * (-math.log(10000.0) / d_model))
    pe = jnp.zeros((seq_len, d_model), dtype=jnp.float32)
    pe = pe.at[:, 0::2].set(jnp.sin(position * div_term))
    pe = pe.at[:, 1::2].set(jnp.cos(position * div_term))
    return pe


def make_causal_mask(seq_len):
    row = jnp.arange(seq_len)[:, None]
    col = jnp.arange(seq_len)[None, :]
    return jnp.where(col <= row, 0.0, -jnp.inf).astype(jnp.float32)


def init_params(key, d_model, d_ff, out_window):
    ks = jax.random.split(key, 6)
    wdt = jnp.bfloat16          # matmul weights live in bf16 (halves HBM traffic)
    p = {}
    p["wqkv"] = (jax.random.normal(ks[0], (d_model, 3 * d_model)) * 0.02).astype(wdt)
    p["bqkv"] = jnp.zeros((1, 3 * d_model), jnp.float32)
    p["wo"] = (jax.random.normal(ks[1], (d_model, d_model)) * 0.02).astype(wdt)
    p["bo"] = jnp.zeros((1, d_model), jnp.float32)
    p["g1"] = jnp.ones((1, d_model), jnp.float32)
    p["be1"] = jnp.zeros((1, d_model), jnp.float32)
    p["w1"] = (jax.random.normal(ks[2], (d_model, d_ff)) * 0.02).astype(wdt)
    p["bf1"] = jnp.zeros((1, d_ff), jnp.float32)
    p["w2"] = (jax.random.normal(ks[3], (d_ff, d_model)) * 0.02).astype(wdt)
    p["bf2"] = jnp.zeros((1, d_model), jnp.float32)
    p["g2"] = jnp.ones((1, d_model), jnp.float32)
    p["be2"] = jnp.zeros((1, d_model), jnp.float32)
    # decoder: PyTorch init_weights -> uniform(-0.1, 0.1) weight, zero bias
    p["wdec"] = jax.random.uniform(ks[4], (d_model, out_window),
                                   minval=-0.1, maxval=0.1).astype(wdt)
    p["bdec"] = jnp.zeros((1, out_window), jnp.float32)
    return p


def _rep_spec(shape):
    # whole-array block, constant index_map -> DMA'd into VMEM once across the grid
    return pl.BlockSpec(shape, lambda b: (0,) * len(shape))


@functools.partial(jax.jit, static_argnames=("nhead",))
def transam_forward(src_sbf, params, *, nhead=NHEAD):
    # src_sbf: (S, B, D) seq-first, like the PyTorch module input.
    S, B, D = src_sbf.shape
    assert D % nhead == 0
    x = jnp.transpose(src_sbf, (1, 0, 2))                     # (B, S, D) batch-major
    pe = make_positional_encoding(S, D)                       # (S, D), added in-kernel
    mask = make_causal_mask(S)                                # (S, S)

    args = (x, pe, mask,
            params["wqkv"], params["bqkv"], params["wo"], params["bo"],
            params["g1"], params["be1"],
            params["w1"], params["bf1"], params["w2"], params["bf2"],
            params["g2"], params["be2"],
            params["wdec"], params["bdec"])

    in_specs = [pl.BlockSpec((None, S, D), lambda b: (b, 0, 0))]   # x: one batch / step
    in_specs += [_rep_spec(a.shape) for a in args[1:]]

    out = pl.pallas_call(
        functools.partial(transam_kernel, H=nhead),
        out_shape=jax.ShapeDtypeStruct((B, S, OUTPUT_WINDOW), jnp.float32),
        grid=(B,),
        in_specs=in_specs,
        out_specs=pl.BlockSpec((None, S, OUTPUT_WINDOW), lambda b: (b, 0, 0)),
        compiler_params=pltpu.CompilerParams(
            dimension_semantics=("parallel",)),
    )(*args)

    # `decoder(output[-1])` in the reference: keep only the last sequence position
    return out[:, S - 1, :]                                    # (B, OUTPUT_WINDOW)


if __name__ == "__main__":
    S, B, D, DFF = 8, 2, 128, 2048   # seq=8, batch=2, feature_size=128 (nhead=4), ffn=2048
    key = jax.random.PRNGKey(0)
    k_x, k_p = jax.random.split(key)
    src = jax.random.normal(k_x, (S, B, D), dtype=jnp.float32)
    params = init_params(k_p, D, DFF, OUTPUT_WINDOW)

    out = transam_forward(src, params)
    out = jax.block_until_ready(out)

    assert out.shape == (B, OUTPUT_WINDOW), out.shape
    assert bool(jnp.all(jnp.isfinite(out))), "non-finite output"
    print("KERNEL_OK")
</pallas_src>

<mosaic_0001>
module attributes {stable_mosaic.version = 11 : i64} {
  func.func @transam_kernel(%arg0: i32, %arg1: memref<1x8x128xf32, #tpu.memory_space<vmem>>, %arg2: memref<8x128xf32, #tpu.memory_space<vmem>>, %arg3: memref<8x8xf32, #tpu.memory_space<vmem>>, %arg4: memref<128x384xbf16, #tpu.memory_space<vmem>>, %arg5: memref<1x384xf32, #tpu.memory_space<vmem>>, %arg6: memref<128x128xbf16, #tpu.memory_space<vmem>>, %arg7: memref<1x128xf32, #tpu.memory_space<vmem>>, %arg8: memref<1x128xf32, #tpu.memory_space<vmem>>, %arg9: memref<1x128xf32, #tpu.memory_space<vmem>>, %arg10: memref<128x2048xbf16, #tpu.memory_space<vmem>>, %arg11: memref<1x2048xf32, #tpu.memory_space<vmem>>, %arg12: memref<2048x128xbf16, #tpu.memory_space<vmem>>, %arg13: memref<1x128xf32, #tpu.memory_space<vmem>>, %arg14: memref<1x128xf32, #tpu.memory_space<vmem>>, %arg15: memref<1x128xf32, #tpu.memory_space<vmem>>, %arg16: memref<128x12xbf16, #tpu.memory_space<vmem>>, %arg17: memref<1x12xf32, #tpu.memory_space<vmem>>, %arg18: memref<1x8x12xf32, #tpu.memory_space<vmem>>) attributes {dimension_semantics = [#tpu.dimension_semantics<parallel>], iteration_bounds = array<i64: 2>, scalar_prefetch = 0 : i64, scratch_operands = 0 : i64, tpu.core_type = #tpu.core_type<tc>, window_params = [{transform_indices = @transform_0, window_bounds = array<i64: 1, 8, 128>}, {pipeline_mode = #tpu.pipeline_mode<synchronous>, transform_indices = @transform_1, window_bounds = array<i64: 8, 128>}, {pipeline_mode = #tpu.pipeline_mode<synchronous>, transform_indices = @transform_2, window_bounds = array<i64: 8, 8>}, {pipeline_mode = #tpu.pipeline_mode<synchronous>, transform_indices = @transform_3, window_bounds = array<i64: 128, 384>}, {pipeline_mode = #tpu.pipeline_mode<synchronous>, transform_indices = @transform_4, window_bounds = array<i64: 1, 384>}, {pipeline_mode = #tpu.pipeline_mode<synchronous>, transform_indices = @transform_5, window_bounds = array<i64: 128, 128>}, {pipeline_mode = #tpu.pipeline_mode<synchronous>, transform_indices = @transform_6, window_bounds = array<i64: 1, 128>}, {pipeline_mode = #tpu.pipeline_mode<synchronous>, transform_indices = @transform_7, window_bounds = array<i64: 1, 128>}, {pipeline_mode = #tpu.pipeline_mode<synchronous>, transform_indices = @transform_8, window_bounds = array<i64: 1, 128>}, {pipeline_mode = #tpu.pipeline_mode<synchronous>, transform_indices = @transform_9, window_bounds = array<i64: 128, 2048>}, {pipeline_mode = #tpu.pipeline_mode<synchronous>, transform_indices = @transform_10, window_bounds = array<i64: 1, 2048>}, {pipeline_mode = #tpu.pipeline_mode<synchronous>, transform_indices = @transform_11, window_bounds = array<i64: 2048, 128>}, {pipeline_mode = #tpu.pipeline_mode<synchronous>, transform_indices = @transform_12, window_bounds = array<i64: 1, 128>}, {pipeline_mode = #tpu.pipeline_mode<synchronous>, transform_indices = @transform_13, window_bounds = array<i64: 1, 128>}, {pipeline_mode = #tpu.pipeline_mode<synchronous>, transform_indices = @transform_14, window_bounds = array<i64: 1, 128>}, {pipeline_mode = #tpu.pipeline_mode<synchronous>, transform_indices = @transform_15, window_bounds = array<i64: 128, 12>}, {pipeline_mode = #tpu.pipeline_mode<synchronous>, transform_indices = @transform_16, window_bounds = array<i64: 1, 12>}, {transform_indices = @transform_17, window_bounds = array<i64: 1, 8, 12>}]} {
    %c0 = arith.constant 0 : index
    %c0_0 = arith.constant 0 : index
    %c0_1 = arith.constant 0 : index
    %0 = vector.load %arg1[%c0, %c0_0, %c0_1] : memref<1x8x128xf32, #tpu.memory_space<vmem>>, vector<1x8x128xf32>
    %1 = vector.shape_cast %0 : vector<1x8x128xf32> to vector<8x128xf32>
    %c0_2 = arith.constant 0 : index
    %c0_3 = arith.constant 0 : index
    %2 = vector.load %arg2[%c0_2, %c0_3] : memref<8x128xf32, #tpu.memory_space<vmem>>, vector<8x128xf32>
    %3 = arith.addf %1, %2 : vector<8x128xf32>
    %4 = arith.truncf %3 : vector<8x128xf32> to vector<8x128xbf16>
    %c0_4 = arith.constant 0 : index
    %c0_5 = arith.constant 0 : index
    %5 = vector.load %arg4[%c0_4, %c0_5] : memref<128x384xbf16, #tpu.memory_space<vmem>>, vector<128x384xbf16>
    %cst = arith.constant dense<0.000000e+00> : vector<8x384xf32>
    %6 = tpu.matmul %4, %5, %cst {dimension_numbers = #tpu.dot_dimension_numbers<[1], [0], [0], [1], [0, 0, 1, 1], [], []>} : vector<8x128xbf16>, vector<128x384xbf16>, vector<8x384xf32> -> vector<8x384xf32>
    %c0_6 = arith.constant 0 : index
    %c0_7 = arith.constant 0 : index
    %7 = vector.load %arg5[%c0_6, %c0_7] : memref<1x384xf32, #tpu.memory_space<vmem>>, vector<1x384xf32>
    %8 = vector.broadcast %7 : vector<1x384xf32> to vector<8x384xf32>
    %9 = arith.addf %6, %8 : vector<8x384xf32>
    %10 = vector.extract_strided_slice %9 {offsets = [0, 0], sizes = [8, 128], strides = [1, 1]} : vector<8x384xf32> to vector<8x128xf32>
    %11 = vector.shape_cast %10 : vector<8x128xf32> to vector<8x4x32xf32>
    %12 = vector.extract_strided_slice %9 {offsets = [0, 128], sizes = [8, 128], strides = [1, 1]} : vector<8x384xf32> to vector<8x128xf32>
    %13 = vector.shape_cast %12 : vector<8x128xf32> to vector<8x4x32xf32>
    %14 = vector.extract_strided_slice %9 {offsets = [0, 256], sizes = [8, 128], strides = [1, 1]} : vector<8x384xf32> to vector<8x128xf32>
    %15 = vector.shape_cast %14 : vector<8x128xf32> to vector<8x4x32xf32>
    %16 = tpu.transpose %11, [1, 0, 2] : vector<8x4x32xf32> -> vector<4x8x32xf32>
    %17 = tpu.transpose %13, [1, 0, 2] : vector<8x4x32xf32> -> vector<4x8x32xf32>
    %18 = tpu.transpose %15, [1, 0, 2] : vector<8x4x32xf32> -> vector<4x8x32xf32>
    "tpu.trace_start"() <{level = 10 : i32, message = "hqd,hkd->hqk"}> : () -> ()
    %cst_8 = arith.constant dense<0.000000e+00> : vector<4x8x8xf32>
    %19 = tpu.matmul %16, %17, %cst_8 {dimension_numbers = #tpu.dot_dimension_numbers<[2], [2], [1], [1], [0, 0, 0, 1, 1, 1], [0], [0]>} : vector<4x8x32xf32>, vector<4x8x32xf32>, vector<4x8x8xf32> -> vector<4x8x8xf32>
    "tpu.trace_stop"() : () -> ()
    %cst_9 = arith.constant 0.176776692 : f32
    %20 = vector.broadcast %cst_9 : f32 to vector<4x8x8xf32>
    %21 = arith.mulf %19, %20 : vector<4x8x8xf32>
    %c0_10 = arith.constant 0 : index
    %c0_11 = arith.constant 0 : index
    %22 = vector.load %arg3[%c0_10, %c0_11] : memref<8x8xf32, #tpu.memory_space<vmem>>, vector<8x8xf32>
    %23 = vector.shape_cast %22 : vector<8x8xf32> to vector<1x8x8xf32>
    %24 = vector.broadcast %23 : vector<1x8x8xf32> to vector<4x8x8xf32>
    %25 = arith.addf %21, %24 : vector<4x8x8xf32>
    %cst_12 = arith.constant dense<0xFF800000> : vector<4x8xf32>
    %26 = vector.multi_reduction <maximumf>, %25, %cst_12 [2] : vector<4x8x8xf32> to vector<4x8xf32>
    %27 = vector.shape_cast %26 : vector<4x8xf32> to vector<4x8x1xf32>
    %28 = vector.broadcast %27 : vector<4x8x1xf32> to vector<4x8x8xf32>
    %29 = arith.subf %25, %28 : vector<4x8x8xf32>
    %30 = math.exp %29 : vector<4x8x8xf32>
    %cst_13 = arith.constant dense<0.000000e+00> : vector<4x8xf32>
    %31 = vector.multi_reduction <add>, %30, %cst_13 [2] : vector<4x8x8xf32> to vector<4x8xf32>
    %32 = vector.shape_cast %31 : vector<4x8xf32> to vector<4x8x1xf32>
    %33 = tpu.reciprocal %32 {approx = true} : vector<4x8x1xf32> -> vector<4x8x1xf32>
    %34 = vector.broadcast %33 : vector<4x8x1xf32> to vector<4x8x8xf32>
    %35 = arith.mulf %30, %34 : vector<4x8x8xf32>
    %36 = arith.truncf %35 : vector<4x8x8xf32> to vector<4x8x8xbf16>
    %37 = arith.truncf %18 : vector<4x8x32xf32> to vector<4x8x32xbf16>
    "tpu.trace_start"() <{level = 10 : i32, message = "hqk,hkd->hqd"}> : () -> ()
    %cst_14 = arith.constant dense<0.000000e+00> : vector<4x8x32xf32>
    %38 = tpu.matmul %36, %37, %cst_14 {dimension_numbers = #tpu.dot_dimension_numbers<[2], [1], [1], [2], [0, 0, 0, 1, 1, 2], [0], [0]>} : vector<4x8x8xbf16>, vector<4x8x32xbf16>, vector<4x8x32xf32> -> vector<4x8x32xf32>
    "tpu.trace_stop"() : () -> ()
    %39 = tpu.transpose %38, [1, 0, 2] : vector<4x8x32xf32> -> vector<8x4x32xf32>
    %40 = vector.shape_cast %39 : vector<8x4x32xf32> to vector<8x128xf32>
    %41 = arith.truncf %40 : vector<8x128xf32> to vector<8x128xbf16>
    %c0_15 = arith.constant 0 : index
    %c0_16 = arith.constant 0 : index
    %42 = vector.load %arg6[%c0_15, %c0_16] : memref<128x128xbf16, #tpu.memory_space<vmem>>, vector<128x128xbf16>
    %cst_17 = arith.constant dense<0.000000e+00> : vector<8x128xf32>
    %43 = tpu.matmul %41, %42, %cst_17 {dimension_numbers = #tpu.dot_dimension_numbers<[1], [0], [0], [1], [0, 0, 1, 1], [], []>} : vector<8x128xbf16>, vector<128x128xbf16>, vector<8x128xf32> -> vector<8x128xf32>
    %c0_18 = arith.constant 0 : index
    %c0_19 = arith.constant 0 : index
    %44 = vector.load %arg7[%c0_18, %c0_19] : memref<1x128xf32, #tpu.memory_space<vmem>>, vector<1x128xf32>
    %45 = vector.broadcast %44 : vector<1x128xf32> to vector<8x128xf32>
    %46 = arith.addf %43, %45 : vector<8x128xf32>
    %47 = arith.addf %3, %46 : vector<8x128xf32>
    %c0_20 = arith.constant 0 : index
    %c0_21 = arith.constant 0 : index
    %48 = vector.load %arg8[%c0_20, %c0_21] : memref<1x128xf32, #tpu.memory_space<vmem>>, vector<1x128xf32>
    %c0_22 = arith.constant 0 : index
    %c0_23 = arith.constant 0 : index
    %49 = vector.load %arg9[%c0_22, %c0_23] : memref<1x128xf32, #tpu.memory_space<vmem>>, vector<1x128xf32>
    %cst_24 = arith.constant dense<0.000000e+00> : vector<8xf32>
    %50 = vector.multi_reduction <add>, %47, %cst_24 [1] : vector<8x128xf32> to vector<8xf32>
    %51 = vector.shape_cast %50 : vector<8xf32> to vector<8x1xf32>
    %cst_25 = arith.constant 1.280000e+02 : f32
    %52 = vector.broadcast %cst_25 : f32 to vector<8x1xf32>
    %53 = arith.divf %51, %52 : vector<8x1xf32>
    %54 = vector.broadcast %53 : vector<8x1xf32> to vector<8x128xf32>
    %55 = arith.subf %47, %54 : vector<8x128xf32>
    %56 = arith.mulf %55, %55 : vector<8x128xf32>
    %cst_26 = arith.constant dense<0.000000e+00> : vector<8xf32>
    %57 = vector.multi_reduction <add>, %56, %cst_26 [1] : vector<8x128xf32> to vector<8xf32>
    %58 = vector.shape_cast %57 : vector<8xf32> to vector<8x1xf32>
    %cst_27 = arith.constant 1.280000e+02 : f32
    %59 = vector.broadcast %cst_27 : f32 to vector<8x1xf32>
    %60 = arith.divf %58, %59 : vector<8x1xf32>
    %61 = vector.broadcast %53 : vector<8x1xf32> to vector<8x128xf32>
    %62 = arith.subf %47, %61 : vector<8x128xf32>
    %cst_28 = arith.constant 9.99999974E-6 : f32
    %63 = vector.broadcast %cst_28 : f32 to vector<8x1xf32>
    %64 = arith.addf %60, %63 : vector<8x1xf32>
    %65 = math.rsqrt %64 : vector<8x1xf32>
    %66 = vector.broadcast %65 : vector<8x1xf32> to vector<8x128xf32>
    %67 = arith.mulf %62, %66 : vector<8x128xf32>
    %68 = vector.broadcast %48 : vector<1x128xf32> to vector<8x128xf32>
    %69 = arith.mulf %67, %68 : vector<8x128xf32>
    %70 = vector.broadcast %49 : vector<1x128xf32> to vector<8x128xf32>
    %71 = arith.addf %69, %70 : vector<8x128xf32>
    %72 = arith.truncf %71 : vector<8x128xf32> to vector<8x128xbf16>
    %c0_29 = arith.constant 0 : index
    %c0_30 = arith.constant 0 : index
    %73 = vector.load %arg10[%c0_29, %c0_30] : memref<128x2048xbf16, #tpu.memory_space<vmem>>, vector<128x2048xbf16>
    %cst_31 = arith.constant dense<0.000000e+00> : vector<8x2048xf32>
    %74 = tpu.matmul %72, %73, %cst_31 {dimension_numbers = #tpu.dot_dimension_numbers<[1], [0], [0], [1], [0, 0, 1, 1], [], []>} : vector<8x128xbf16>, vector<128x2048xbf16>, vector<8x2048xf32> -> vector<8x2048xf32>
    %c0_32 = arith.constant 0 : index
    %c0_33 = arith.constant 0 : index
    %75 = vector.load %arg11[%c0_32, %c0_33] : memref<1x2048xf32, #tpu.memory_space<vmem>>, vector<1x2048xf32>
    %76 = vector.broadcast %75 : vector<1x2048xf32> to vector<8x2048xf32>
    %77 = arith.addf %74, %76 : vector<8x2048xf32>
    %cst_34 = arith.constant 0.000000e+00 : f32
    %78 = vector.broadcast %cst_34 : f32 to vector<8x2048xf32>
    %79 = arith.maximumf %77, %78 : vector<8x2048xf32>
    %80 = arith.truncf %79 : vector<8x2048xf32> to vector<8x2048xbf16>
    %c0_35 = arith.constant 0 : index
    %c0_36 = arith.constant 0 : index
    %81 = vector.load %arg12[%c0_35, %c0_36] : memref<2048x128xbf16, #tpu.memory_space<vmem>>, vector<2048x128xbf16>
    %cst_37 = arith.constant dense<0.000000e+00> : vector<8x128xf32>
    %82 = tpu.matmul %80, %81, %cst_37 {dimension_numbers = #tpu.dot_dimension_numbers<[1], [0], [0], [1], [0, 0, 1, 1], [], []>} : vector<8x2048xbf16>, vector<2048x128xbf16>, vector<8x128xf32> -> vector<8x128xf32>
    %c0_38 = arith.constant 0 : index
    %c0_39 = arith.constant 0 : index
    %83 = vector.load %arg13[%c0_38, %c0_39] : memref<1x128xf32, #tpu.memory_space<vmem>>, vector<1x128xf32>
    %84 = vector.broadcast %83 : vector<1x128xf32> to vector<8x128xf32>
    %85 = arith.addf %82, %84 : vector<8x128xf32>
    %86 = arith.addf %71, %85 : vector<8x128xf32>
    %c0_40 = arith.constant 0 : index
    %c0_41 = arith.constant 0 : index
    %87 = vector.load %arg14[%c0_40, %c0_41] : memref<1x128xf32, #tpu.memory_space<vmem>>, vector<1x128xf32>
    %c0_42 = arith.constant 0 : index
    %c0_43 = arith.constant 0 : index
    %88 = vector.load %arg15[%c0_42, %c0_43] : memref<1x128xf32, #tpu.memory_space<vmem>>, vector<1x128xf32>
    %cst_44 = arith.constant dense<0.000000e+00> : vector<8xf32>
    %89 = vector.multi_reduction <add>, %86, %cst_44 [1] : vector<8x128xf32> to vector<8xf32>
    %90 = vector.shape_cast %89 : vector<8xf32> to vector<8x1xf32>
    %cst_45 = arith.constant 1.280000e+02 : f32
    %91 = vector.broadcast %cst_45 : f32 to vector<8x1xf32>
    %92 = arith.divf %90, %91 : vector<8x1xf32>
    %93 = vector.broadcast %92 : vector<8x1xf32> to vector<8x128xf32>
    %94 = arith.subf %86, %93 : vector<8x128xf32>
    %95 = arith.mulf %94, %94 : vector<8x128xf32>
    %cst_46 = arith.constant dense<0.000000e+00> : vector<8xf32>
    %96 = vector.multi_reduction <add>, %95, %cst_46 [1] : vector<8x128xf32> to vector<8xf32>
    %97 = vector.shape_cast %96 : vector<8xf32> to vector<8x1xf32>
    %cst_47 = arith.constant 1.280000e+02 : f32
    %98 = vector.broadcast %cst_47 : f32 to vector<8x1xf32>
    %99 = arith.divf %97, %98 : vector<8x1xf32>
    %100 = vector.broadcast %92 : vector<8x1xf32> to vector<8x128xf32>
    %101 = arith.subf %86, %100 : vector<8x128xf32>
    %cst_48 = arith.constant 9.99999974E-6 : f32
    %102 = vector.broadcast %cst_48 : f32 to vector<8x1xf32>
    %103 = arith.addf %99, %102 : vector<8x1xf32>
    %104 = math.rsqrt %103 : vector<8x1xf32>
    %105 = vector.broadcast %104 : vector<8x1xf32> to vector<8x128xf32>
    %106 = arith.mulf %101, %105 : vector<8x128xf32>
    %107 = vector.broadcast %87 : vector<1x128xf32> to vector<8x128xf32>
    %108 = arith.mulf %106, %107 : vector<8x128xf32>
    %109 = vector.broadcast %88 : vector<1x128xf32> to vector<8x128xf32>
    %110 = arith.addf %108, %109 : vector<8x128xf32>
    %111 = arith.truncf %110 : vector<8x128xf32> to vector<8x128xbf16>
    %c0_49 = arith.constant 0 : index
    %c0_50 = arith.constant 0 : index
    %112 = vector.load %arg16[%c0_49, %c0_50] : memref<128x12xbf16, #tpu.memory_space<vmem>>, vector<128x12xbf16>
    %cst_51 = arith.constant dense<0.000000e+00> : vector<8x12xf32>
    %113 = tpu.matmul %111, %112, %cst_51 {dimension_numbers = #tpu.dot_dimension_numbers<[1], [0], [0], [1], [0, 0, 1, 1], [], []>} : vector<8x128xbf16>, vector<128x12xbf16>, vector<8x12xf32> -> vector<8x12xf32>
    %c0_52 = arith.constant 0 : index
    %c0_53 = arith.constant 0 : index
    %114 = vector.load %arg17[%c0_52, %c0_53] : memref<1x12xf32, #tpu.memory_space<vmem>>, vector<1x12xf32>
    %115 = vector.broadcast %114 : vector<1x12xf32> to vector<8x12xf32>
    %116 = arith.addf %113, %115 : vector<8x12xf32>
    %c0_54 = arith.constant 0 : index
    %c0_55 = arith.constant 0 : index
    %c0_56 = arith.constant 0 : index
    %117 = vector.load %arg18[%c0_54, %c0_55, %c0_56] : memref<1x8x12xf32, #tpu.memory_space<vmem>>, vector<1x8x12xf32>
    %118 = vector.shape_cast %117 : vector<1x8x12xf32> to vector<8x12xf32>
    %119 = vector.shape_cast %116 : vector<8x12xf32> to vector<1x8x12xf32>
    tpu.vector_store %arg18[%c0_54, %c0_55, %c0_56], %119 {strides = array<i32>} : memref<1x8x12xf32, #tpu.memory_space<vmem>>, vector<1x8x12xf32>,
    return
  }
  func.func @transform_0(%arg0: i32) -> (i32, i32, i32) {
    %c0_i32 = arith.constant 0 : i32
    %c0_i32_0 = arith.constant 0 : i32
    %c0_i32_1 = arith.constant 0 : i32
    return %arg0, %c0_i32, %c0_i32_0 : i32, i32, i32
  }
  func.func @transform_1(%arg0: i32) -> (i32, i32) {
    %c0_i32 = arith.constant 0 : i32
    %c0_i32_0 = arith.constant 0 : i32
    %c0_i32_1 = arith.constant 0 : i32
    return %c0_i32, %c0_i32_0 : i32, i32
  }
  func.func @transform_2(%arg0: i32) -> (i32, i32) {
    %c0_i32 = arith.constant 0 : i32
    %c0_i32_0 = arith.constant 0 : i32
    %c0_i32_1 = arith.constant 0 : i32
    return %c0_i32, %c0_i32_0 : i32, i32
  }
  func.func @transform_3(%arg0: i32) -> (i32, i32) {
    %c0_i32 = arith.constant 0 : i32
    %c0_i32_0 = arith.constant 0 : i32
    %c0_i32_1 = arith.constant 0 : i32
    return %c0_i32, %c0_i32_0 : i32, i32
  }
  func.func @transform_4(%arg0: i32) -> (i32, i32) {
    %c0_i32 = arith.constant 0 : i32
    %c0_i32_0 = arith.constant 0 : i32
    %c0_i32_1 = arith.constant 0 : i32
    return %c0_i32, %c0_i32_0 : i32, i32
  }
  func.func @transform_5(%arg0: i32) -> (i32, i32) {
    %c0_i32 = arith.constant 0 : i32
    %c0_i32_0 = arith.constant 0 : i32
    %c0_i32_1 = arith.constant 0 : i32
    return %c0_i32, %c0_i32_0 : i32, i32
  }
  func.func @transform_6(%arg0: i32) -> (i32, i32) {
    %c0_i32 = arith.constant 0 : i32
    %c0_i32_0 = arith.constant 0 : i32
    %c0_i32_1 = arith.constant 0 : i32
    return %c0_i32, %c0_i32_0 : i32, i32
  }
  func.func @transform_7(%arg0: i32) -> (i32, i32) {
    %c0_i32 = arith.constant 0 : i32
    %c0_i32_0 = arith.constant 0 : i32
    %c0_i32_1 = arith.constant 0 : i32
    return %c0_i32, %c0_i32_0 : i32, i32
  }
  func.func @transform_8(%arg0: i32) -> (i32, i32) {
    %c0_i32 = arith.constant 0 : i32
    %c0_i32_0 = arith.constant 0 : i32
    %c0_i32_1 = arith.constant 0 : i32
    return %c0_i32, %c0_i32_0 : i32, i32
  }
  func.func @transform_9(%arg0: i32) -> (i32, i32) {
    %c0_i32 = arith.constant 0 : i32
    %c0_i32_0 = arith.constant 0 : i32
    %c0_i32_1 = arith.constant 0 : i32
    return %c0_i32, %c0_i32_0 : i32, i32
  }
  func.func @transform_10(%arg0: i32) -> (i32, i32) {
    %c0_i32 = arith.constant 0 : i32
    %c0_i32_0 = arith.constant 0 : i32
    %c0_i32_1 = arith.constant 0 : i32
    return %c0_i32, %c0_i32_0 : i32, i32
  }
  func.func @transform_11(%arg0: i32) -> (i32, i32) {
    %c0_i32 = arith.constant 0 : i32
    %c0_i32_0 = arith.constant 0 : i32
    %c0_i32_1 = arith.constant 0 : i32
    return %c0_i32, %c0_i32_0 : i32, i32
  }
  func.func @transform_12(%arg0: i32) -> (i32, i32) {
    %c0_i32 = arith.constant 0 : i32
    %c0_i32_0 = arith.constant 0 : i32
    %c0_i32_1 = arith.constant 0 : i32
    return %c0_i32, %c0_i32_0 : i32, i32
  }
  func.func @transform_13(%arg0: i32) -> (i32, i32) {
    %c0_i32 = arith.constant 0 : i32
    %c0_i32_0 = arith.constant 0 : i32
    %c0_i32_1 = arith.constant 0 : i32
    return %c0_i32, %c0_i32_0 : i32, i32
  }
  func.func @transform_14(%arg0: i32) -> (i32, i32) {
    %c0_i32 = arith.constant 0 : i32
    %c0_i32_0 = arith.constant 0 : i32
    %c0_i32_1 = arith.constant 0 : i32
    return %c0_i32, %c0_i32_0 : i32, i32
  }
  func.func @transform_15(%arg0: i32) -> (i32, i32) {
    %c0_i32 = arith.constant 0 : i32
    %c0_i32_0 = arith.constant 0 : i32
    %c0_i32_1 = arith.constant 0 : i32
    return %c0_i32, %c0_i32_0 : i32, i32
  }
  func.func @transform_16(%arg0: i32) -> (i32, i32) {
    %c0_i32 = arith.constant 0 : i32
    %c0_i32_0 = arith.constant 0 : i32
    %c0_i32_1 = arith.constant 0 : i32
    return %c0_i32, %c0_i32_0 : i32, i32
  }
  func.func @transform_17(%arg0: i32) -> (i32, i32, i32) {
    %c0_i32 = arith.constant 0 : i32
    %c0_i32_0 = arith.constant 0 : i32
    %c0_i32_1 = arith.constant 0 : i32
    return %arg0, %c0_i32, %c0_i32_0 : i32, i32, i32
  }
}

</mosaic_0001>

<bundles_post_ra>
// kernel: transam_forward.1
= control target key start
LH: loop header
LB: loop body
LE: loop exit
PB: predicated region body
PF: predicated region fallthrough
CT: control target
= control target key end

     0   :  { %s6474_s0 = inlined_call_operand.vmem [shape: f32[2,8,128], index: 0, kind: input, shape index: {}]   ;;  %s6475_s1 = inlined_call_operand.vmem [shape: f32[8,128], index: 1, kind: input, shape index: {}]   ;;  %s6476_s2 = inlined_call_operand.vmem [shape: f32[8,8], index: 2, kind: input, shape index: {}]   ;;  %s6477_s3 = inlined_call_operand.vmem [shape: bf16[128,384], index: 3, kind: input, shape index: {}]   ;;  %s6478_s4 = inlined_call_operand.vmem [shape: f32[1,384], index: 4, kind: input, shape index: {}]   ;;  %s6479_s5 = inlined_call_operand.vmem [shape: bf16[128,128], index: 5, kind: input, shape index: {}]   ;;  %s6480_s6 = inlined_call_operand.vmem [shape: f32[1,128], index: 6, kind: input, shape index: {}]   ;;  %s6481_s7 = inlined_call_operand.vmem [shape: f32[1,128], index: 7, kind: input, shape index: {}]   ;;  %s6482_s8 = inlined_call_operand.vmem [shape: f32[1,128], index: 8, kind: input, shape index: {}]   ;;  %s6483_s9 = inlined_call_operand.hbm [shape: bf16[128,2048], index: 9, kind: input, shape index: {}]   ;;  %s6484_s10 = inlined_call_operand.vmem [shape: f32[1,2048], index: 10, kind: input, shape index: {}]   ;;  %s6485_s11 = inlined_call_operand.hbm [shape: bf16[2048,128], index: 11, kind: input, shape index: {}]   ;;  %s6486_s12 = inlined_call_operand.vmem [shape: f32[1,128], index: 12, kind: input, shape index: {}]   ;;  %s6487_s13 = inlined_call_operand.vmem [shape: f32[1,128], index: 13, kind: input, shape index: {}]   ;;  %s6488_s14 = inlined_call_operand.vmem [shape: f32[1,128], index: 14, kind: input, shape index: {}]   ;;  %s6489_s15 = inlined_call_operand.vmem [shape: bf16[128,12], index: 15, kind: input, shape index: {}]   ;;  %s6490_s16 = inlined_call_operand.vmem [shape: f32[1,12], index: 16, kind: input, shape index: {}]   ;;  %s6491_s17 = inlined_call_operand.vmem [shape: f32[2,8,12], index: 17, kind: output, shape index: {}]  }
   0x1   :  { %6492 = sst [smem:[#allocation8_spill]] %s6474_s0 }
   0x2   :  { %6493 = sst [smem:[#allocation9_spill]] %s6475_s1 }
   0x3   :  { %6494 = sst [smem:[#allocation10_spill]] %s6483_s9 }
   0x4   :  { %22 = vsyncpa [#allocation3], 0 }
   0x5   :  { %23 = vsyncpa [#allocation5], 0  ;;  %s5968_s24 = smov 0  }
   0x6 LB: > { %s5974_s25 = sadd.s32 4294967295, %s5863_s24   ;;  %p4904_p0 = scmp.ge.s32.totalorder %s5863_s24, 1  ;;  %s5863_s24 = sphi %s5968_s24, %s29_s24  }
   0x7   : > { %p422_p1 = scmp.lt.s32.totalorder %s5863_s24, 3  ;;  %s5865_s26 = smov [#allocation2]  }
   0x8   : > { %s458_s27 = sshll.u32 %s5865_s26, 4  ;;  %p5576_p3 = scmp.eq.s32.totalorder %s5974_s25, 0  ;;  %s459_s27 = int_to_ptr.vmem [resolvable:$true] %s458_s27 }
   0x9   : > { %p5978_p2 = pnand %p4904_p0, %p422_p1  ;;  %s5866_s29 = smov [#allocation4]  }
   0xa   : > { %s474_s0 = sshll.u32 %s5866_s29, 4  ;;  %s5808_s18 = scalar_lea.vmem %s459_s27, 16384  ;;  %s475_s0 = int_to_ptr.vmem [resolvable:$true] %s474_s0 }
   0xb   : > { %p5569_p4 = pneg %p5978_p2  ;;  %p5809_p7 = scmp.ne.s32.totalorder %s459_s27, %s5808_s18 }
   0xc   : > { %p5816_p10 = scmp.lt.s32.totalorder %s459_s27, %s459_s27  ;;  %p5817_p11 = scmp.lt.s32.totalorder %s5808_s18, %s5808_s18 }
   0xd   : > { %p5987_p5 = pnand %p5576_p3, %p5569_p4 }
   0xe   : > { %p5818_p12 = por %p5817_p11, %p5816_p10 }
   0xf   : > { %p5799_p6 = pneg %p5987_p5 }
  0x11   : > { %p5811_p8 = pnand %p5809_p7, %p5799_p6 }
  0x13   : > { %p5812_p9 = pneg %p5811_p8 }
  0x15   : > { %p5819_p13 = pnand %p5818_p12, %p5812_p9 }
  0x17   : > { %5822 = shalt.err (!%p5819_p13)
}
  0x18   : > { %s5867_s19 = smov 1024   ;;  %s5868_s1 = smov 64  }
  0x19   : > { %s6497_s9 = sld [smem:[#allocation10_spill]]  ;;  %s5834_s22 = scalar_lea.vmem %s475_s0, 16384 }
  0x1a   : > { %p5835_p0 = scmp.ne.s32.totalorder %s475_s0, %s5834_s22  ;;  %p5842_p7 = scmp.lt.s32.totalorder %s475_s0, %s475_s0 }
  0x1b   : > { %p5843_p8 = scmp.lt.s32.totalorder %s5834_s22, %s5834_s22 }
  0x1c   : > { %p5837_p1 = pnand %p5835_p0, %p5799_p6 }
  0x1d   : > { %p5844_p10 = por %p5843_p8, %p5842_p7 }
  0x1e   : > { %p5838_p4 = pneg %p5837_p1 }
  0x1f   : > { %5572 = dma.hbm_to_vmem [thread:$0]  (!%p5987_p5), %s6497_s9, 16384, %s459_s27, [#allocation3], %s5867_s19, %s5867_s19, %s5868_s1  }
  0x20   : > { %p5845_p9 = pnand %p5844_p10, %p5838_p4 }
  0x22   : > { %5848 = shalt.err (!%p5845_p9)
}
  0x23   : > { %s5869_s23 = smov 4   ;;  %512 = sbr.rel (%p5978_p2) target bundleno = 2826 (0xb0a), region = 88 }
  0x24   : > { %5575 = dma.hbm_to_vmem [thread:$0]  (!%p5987_p5), %s6485_s11, 16384, %s475_s0, [#allocation5], %s5868_s1, %s5868_s1, %s5869_s23  }
  0x28   : > { %5854 = dma.done.wait (%p5576_p3), [#allocation3], 16384  }
  0x29   : > { %5856 = vsyncadd (%p5576_p3), [#allocation3], 4294950912 }
  0x2a   : > { %5858 = dma.done.wait (%p5576_p3), [#allocation5], 16384  }
  0x2b   : > { %5860 = vsyncadd (%p5576_p3), [#allocation5], 4294950912  ;;  %v5870_v0 = vmov 0   ;;  %v5601_v1 = vld [vmem:[%s6477_s3 + $0xac] ss:$12 sps:$4 sm:$0xff]   ;;  %p566_p2 = scmp.lt.s32.totalorder %s5974_s25, 1  ;;  %v613_v26 = vlaneseq }
  0x2c   : > { %788 = vmatprep.mubr.bf16.mxu0 %v5870_v0  ;;  %v5603_v2 = vld [vmem:[%s6477_s3 + $0xa8] ss:$12 sps:$4 sm:$0xff]   ;;  %756 = vmatprep.subr.bf16.mxu0 %v5601_v1  ;;  %v5606_v4 = vld [vmem:[%s6477_s3 + $0x90] ss:$12 sps:$4 sm:$0xff]   ;;  %v5609_v6 = vld [vmem:[%s6477_s3 + $0x78] ss:$12 sps:$4 sm:$0xff]  }
  0x2d   : > { %v5604_v3 = vld [vmem:[%s6477_s3 + $0x94] ss:$12 sps:$4 sm:$0xff]   ;;  %757 = vmatpush1.bf16.msra.mxu0 %v5603_v2  ;;  %v5607_v5 = vld [vmem:[%s6477_s3 + $0x7c] ss:$12 sps:$4 sm:$0xff]   ;;  %s6501_s25 = smov (!%p566_p2, %s5974_s25), 1  ;;  %s6498_s18 = sld [smem:[#allocation8_spill]] }
  0x2e   : > { %758 = vmatprep.subr.bf16.mxu0 %v5604_v3  ;;  %v5610_v7 = vld [vmem:[%s6477_s3 + $0x64] ss:$12 sps:$4 sm:$0xff]   ;;  %s4911_s28 = sshll.u32 %s6501_s25, 3  ;;  %v5612_v8 = vld [vmem:[%s6477_s3 + $0x60] ss:$12 sps:$4 sm:$0xff]   ;;  %s6499_s23 = sld [smem:[#allocation9_spill]] }
  0x2f   : > { %v5613_v9 = vld [vmem:[%s6477_s3 + $0x4c] ss:$12 sps:$4 sm:$0xff]   ;;  %v5615_v10 = vld [vmem:[%s6477_s3 + $0x48] ss:$12 sps:$4 sm:$0xff]   ;;  %v5618_v12 = vld [vmem:[%s6477_s3 + $0x30] ss:$12 sps:$4 sm:$0xff]   ;;  %s573_s0 = scalar_lea.vmem %s6491_s17, %s4911_s28 }
  0x30   : > { %v5616_v11 = vld [vmem:[%s6477_s3 + $0x34] ss:$12 sps:$4 sm:$0xff]   ;;  %v5619_v13 = vld [vmem:[%s6477_s3 + $0x1c] ss:$12 sps:$4 sm:$0xff]   ;;  %v5621_v14 = vld [vmem:[%s6477_s3 + $0x18] ss:$12 sps:$4 sm:$0xff]  }
  0x31   : > { %759 = vmatpush1.bf16.msra.mxu0 %v5606_v4  ;;  %v5622_v17 = vld [vmem:[%s6477_s3 + $0x4] ss:$12 sps:$4 sm:$0xff]   ;;  %v5624_v18 = vld [vmem:[%s6477_s3] ss:$12 sps:$4 sm:$0xff]   ;;  %v5871_v22 = vmov 0.0   ;;  %v6106_v28 = vshrl.u32 %v613_v26, 7 }
  0x32   : > { %760 = vmatprep.subr.bf16.mxu0 %v5607_v5  ;;  %v5625_v21 = vld [vmem:[%s6477_s3 + $0xb0] ss:$12 sps:$4 sm:$0xff]   ;;  %5457 = vmatprep.subr.bf16.mxu1 %v5871_v22  ;;  %v5626_v23 = vld [vmem:[%s6477_s3 + $0x98] ss:$12 sps:$4 sm:$0xff]   ;;  %v5627_v24 = vld [vmem:[%s6477_s3 + $0x80] ss:$12 sps:$4 sm:$0xff]  }
  0x33   : > { %s569_s19 = scalar_lea.vmem %s6498_s18, %s4911_s28  ;;  %5458 = vmatpush3.bf16.msra.mxu1 %v5625_v21  ;;  %v5628_v25 = vld [vmem:[%s6477_s3 + $0x68] ss:$12 sps:$4 sm:$0xff]   ;;  %v5629_v27 = vld [vmem:[%s6477_s3 + $0x50] ss:$12 sps:$4 sm:$0xff]   ;;  %v5630_v29 = vld [vmem:[%s6477_s3 + $0x38] ss:$12 sps:$4 sm:$0xff]  }
  0x34   : > { %v575_v15 = vld [vmem:[%s569_s19] sm:$0xff]  ;;  %5459 = vmatprep.subr.bf16.mxu1 %v5871_v22  ;;  %v6113_v30 = vsub.s32 0, %v6106_v28  ;;  %v6122_v32 = vsub.s32 1, %v6106_v28  ;;  %v5632_v37 = vld [vmem:[%s6477_s3 + $0x8] ss:$12 sps:$4 sm:$0xff]   ;;  %s5872_s1 = smov 96  }
  0x35   : > { %761 = vmatpush1.bf16.msra.mxu0 %v5609_v6  ;;  %v576_v16 = vld [vmem:[%s6499_s23] sm:$0xff]  ;;  %vm5873_vm0 = vmmov 0   ;;  %s5874_s20 = smov 32   ;;  %s5875_s21 = smov 64   ;;  %v5876_v43 = vmov 1983009808  }
  0x36   : > { %762 = vmatprep.subr.bf16.mxu0 %v5610_v7  ;;  %v6081_v19 = vadd.f32 %v576_v16, %v575_v15  ;;  %v6118_v31 = vld [vmem:[%s6478_s4] sm:$0x7]  ;;  %5473 = vmatprep.mubr.msk.bf16.mxu1 %vm5873_vm0, %v5871_v22  ;;  %v850_v44 = vunpack.c.l.s4 %v5876_v43  ;;  %v5877_v45 = vmov 1934713408   ;;  %vm1275_vm1 = vcmask 261120  }
  0x37   : > { %5460 = vmatpush3.bf16.msra.mxu1 %v5626_v23  ;;  %v5631_v33 = vld [vmem:[%s6477_s3 + $0x20] ss:$12 sps:$4 sm:$0xff]   ;;  %v616_v34 = vrot.slane %v6118_v31, %v6113_v30  ;;  %v620_v35 = vrot.slane %v6118_v31, %v6122_v32  ;;  %v882_v46 = vunpack.c.l.s4 %v5877_v45  ;;  %vm1589_vm2 = vcmask 64512  }
  0x38   : > { %v578_v20 = vpack.c.bf16 %v6081_v19, %v6081_v19  ;;  %5461 = vmatprep.subr.bf16.mxu1 %v5871_v22  ;;  %v851_v48 = vunpack.c.0.s8 %v850_v44  ;;  %vm1645_vm3 = vcmask 1043456   ;;  %vm1976_vm4 = vcmask 523264  }
  0x39   : > { %763 = vmatpush1.bf16.msra.mxu0 %v5612_v8  ;;  %v883_v50 = vunpack.c.0.s8 %v882_v46  ;;  %vm1978_vm5 = vcmask 785408   ;;  %vm4825_vm6 = vcmask 97280  }
  0x3a   : > { %764 = vmatprep.subr.bf16.mxu0 %v5613_v9  ;;  %v6149_v52 = vsub.s32 %v851_v48, %v6106_v28 }
  0x3b   : > { %5462 = vmatpush3.bf16.msra.mxu1 %v5627_v24  ;;  %v6152_v58 = vsub.s32 %v883_v50, %v6106_v28 }
  0x3c   : > { %5463 = vmatprep.subr.bf16.mxu1 %v5871_v22 }
  0x3d   : > { %765 = vmatpush1.bf16.msra.mxu0 %v5615_v10 }
  0x3e   : > { %766 = vmatprep.subr.bf16.mxu0 %v5616_v11 }
  0x3f   : > { %5464 = vmatpush3.bf16.msra.mxu1 %v5628_v25 }
  0x40   : > { %5465 = vmatprep.subr.bf16.mxu1 %v5871_v22 }
  0x41   : > { %767 = vmatpush1.bf16.msra.mxu0 %v5618_v12 }
  0x42   : > { %768 = vmatprep.subr.bf16.mxu0 %v5619_v13 }
  0x43   : > { %5466 = vmatpush3.bf16.msra.mxu1 %v5629_v27 }
  0x44   : > { %5467 = vmatprep.subr.bf16.mxu1 %v5871_v22 }
  0x45   : > { %769 = vmatpush1.bf16.msra.mxu0 %v5621_v14 }
  0x46   : > { %770 = vmatprep.subr.bf16.mxu0 %v5622_v17 }
  0x47   : > { %5468 = vmatpush3.bf16.msra.mxu1 %v5630_v29 }
  0x48   : > { %5469 = vmatprep.subr.bf16.mxu1 %v5871_v22 }
  0x49   : > { %771 = vmatpush1.bf16.msra.mxu0 %v5624_v18 }
  0x4a   : > { %5477 = vmatprep.subr.mxu0 %v5871_v22 }
  0x4b   : > { %5470 = vmatpush3.bf16.msra.mxu1 %v5631_v33 }
  0x4c   : > { %789 = vmatmul.mubr.bf16.vlgmr.msra.gmra.mxu0 %v578_v20  ;;  %5471 = vmatprep.subr.bf16.mxu1 %v5871_v22 }
  0x4d   : > { %5479 = vmatprep.mubr.msk.f32.mxu0 %vm5873_vm0, %v5871_v22 }
  0x4f   : > { %5472 = vmatpush3.bf16.msra.mxu1 %v5632_v37 }
  0x50   : > { %5482 = vmatprep.subr.mxu1 %v5871_v22 }
  0x52   : > { %5474 = vmatmul.mubr.bf16.vlgmr.msra.gmra.mxu1 %v578_v20 }
  0x53   : > { %5484 = vmatprep.mubr.msk.f32.mxu1 %vm5873_vm0, %v5871_v22 }
 0x10c   : > { %v790_v36 = vpop.f32.mrf.mxu0 }
 0x10d   : > { %v791_v38 = vadd.f32 %v790_v36, %v616_v34 }
 0x10e   : > { %v792_v39 = vpop.f32.mrf.mxu0 }
 0x10f   : > { %v793_v40 = vadd.f32 %v792_v39, %v620_v35  ;;  %838 = vrot.lane.b32.xlu1 %v791_v38, %s5872_s1 }
 0x110   : > { %v794_v41 = vpop.f32.mrf.mxu0 }
 0x111   : > { %916 = vrot.lane.b32.xlu0 %v793_v40, %s5872_s1 }
 0x112   : > { %v795_v42 = vpop.f32.mrf.mxu0 }
 0x113   : > { %922 = vrot.lane.b32.xlu1 %v793_v40, %s5874_s20 }
 0x115   : > { %919 = vrot.lane.b32.xlu0 %v793_v40, %s5875_s21 }
 0x117   : > { %844 = vrot.lane.b32.xlu1 %v791_v38, %s5874_s20 }
 0x119   : > { %841 = vrot.lane.b32.xlu0 %v791_v38, %s5875_s21 }
 0x181   : > { %v839_v47 = vpop.permute.xlu1 %838 }
 0x183   : > { %v917_v49 = vpop.permute.xlu0 %916 }
 0x185   : > { %v923_v51 = vpop.permute.xlu1 %922 }
 0x186   : > { %v941_v53 = vcombine.low %v917_v49, %v923_v51  ;;  %v942_v54 = vcombine.high %v917_v49, %v923_v51 }
 0x187   : > { %v920_v55 = vpop.permute.xlu0 %919 }
 0x188   : > { %v925_v56 = vcombine.low %v793_v40, %v920_v55  ;;  %v926_v57 = vcombine.high %v793_v40, %v920_v55  ;;  %v949_v60 = vrot.slane %v941_v53, %v6149_v52  ;;  %v956_v61 = vrot.slane %v942_v54, %v6149_v52 }
 0x189   : > { %v845_v59 = vpop.permute.xlu1 %844 }
 0x18a   : > { %v933_v62 = vrot.slane %v925_v56, %v6149_v52  ;;  %v940_v63 = vrot.slane %v926_v57, %v6149_v52  ;;  %v863_v1 = vcombine.low %v839_v47, %v845_v59  ;;  %v864_v2 = vcombine.high %v839_v47, %v845_v59 }
 0x18b   : > { %v842_v3 = vpop.permute.xlu0 %841 }
 0x18c   : > { %v957_v4 = vcombine.low %v933_v62, %v949_v60  ;;  %v958_v5 = vcombine.high %v933_v62, %v949_v60  ;;  %v973_v6 = vcombine.low %v940_v63, %v956_v61  ;;  %v974_v7 = vcombine.high %v940_v63, %v956_v61 }
 0x18d   : > { %v847_v8 = vcombine.low %v791_v38, %v842_v3  ;;  %v848_v9 = vcombine.high %v791_v38, %v842_v3  ;;  %v871_v14 = vrot.slane %v863_v1, %v6149_v52  ;;  %v878_v15 = vrot.slane %v864_v2, %v6149_v52 }
 0x18e   : > { %v965_v10 = vrot.slane %v957_v4, %v6152_v58  ;;  %v972_v11 = vrot.slane %v958_v5, %v6152_v58  ;;  %v981_v12 = vrot.slane %v973_v6, %v6152_v58  ;;  %v988_v13 = vrot.slane %v974_v7, %v6152_v58 }
 0x18f   : > { %v855_v16 = vrot.slane %v847_v8, %v6149_v52  ;;  %v862_v17 = vrot.slane %v848_v9, %v6149_v52 }
 0x190   : > { %v1139_v18 = vcombine.low %v965_v10, %v972_v11  ;;  %v4939_v20 = vcombine.high %v965_v10, %v972_v11  ;;  %v1155_v21 = vcombine.low %v981_v12, %v988_v13  ;;  %v4940_v23 = vcombine.high %v981_v12, %v988_v13  ;;  %v831_v11 = vpop.f32.mrf.mxu1 }
 0x191   : > { %v879_v24 = vcombine.low %v855_v16, %v871_v14  ;;  %v880_v25 = vcombine.high %v855_v16, %v871_v14  ;;  %v895_v26 = vcombine.low %v862_v17, %v878_v15  ;;  %v896_v27 = vcombine.high %v862_v17, %v878_v15  ;;  %v1584_v17 = vld [vmem:[%s6476_s2] sm:$0xff] }
 0x192   : > { %v1146_v29 = vrot.slane %v1139_v18, %v6149_v52  ;;  %v1154_v33 = vrot.slane %v4939_v20, %v6149_v52  ;;  %v1162_v34 = vrot.slane %v1155_v21, %v6149_v52  ;;  %v1170_v35 = vrot.slane %v4940_v23, %v6149_v52  ;;  %v5475_v12 = vpop.f32.mrf.mxu1 }
 0x193   : > { %v887_v36 = vrot.slane %v879_v24, %v6152_v58  ;;  %v894_v37 = vrot.slane %v880_v25, %v6152_v58  ;;  %v903_v38 = vrot.slane %v895_v26, %v6152_v58  ;;  %v910_v39 = vrot.slane %v896_v27, %v6152_v58 }
 0x194   : > { %v1171_v40 = vcombine.low %v1146_v29, %v1154_v33  ;;  %v1187_v41 = vcombine.low %v1162_v34, %v1170_v35  ;;  %v1172_v46 = vcombine.high %v1146_v29, %v1154_v33  ;;  %v1188_v47 = vcombine.high %v1162_v34, %v1170_v35  ;;  %v834_v13 = vpop.f32.mrf.mxu1 }
 0x195   : > { %v1071_v42 = vcombine.low %v887_v36, %v894_v37  ;;  %v4937_v43 = vcombine.high %v887_v36, %v894_v37  ;;  %v1087_v44 = vcombine.low %v903_v38, %v910_v39  ;;  %v4938_v45 = vcombine.high %v903_v38, %v910_v39 }
 0x196   : > { %v1179_v48 = vrot.slane %v1171_v40, %v6152_v58  ;;  %v1195_v49 = vrot.slane %v1187_v41, %v6152_v58  ;;  %v1186_v62 = vrot.slane %v1172_v46, %v6152_v58  ;;  %v1202_v63 = vrot.slane %v1188_v47, %v6152_v58  ;;  %v5476_v14 = vpop.f32.mrf.mxu1 }
 0x197   : > { %v1078_v50 = vrot.slane %v1071_v42, %v6149_v52  ;;  %v1086_v51 = vrot.slane %v4937_v43, %v6149_v52  ;;  %v1094_v53 = vrot.slane %v1087_v44, %v6149_v52  ;;  %v1102_v54 = vrot.slane %v4938_v45, %v6149_v52 }
 0x198   : > { %v1203_v55 = vcombine.low %v1179_v48, %v1195_v49  ;;  %v1204_v56 = vcombine.high %v1179_v48, %v1195_v49  ;;  %v1205_v7 = vcombine.low %v1186_v62, %v1202_v63  ;;  %v1206_v8 = vcombine.high %v1186_v62, %v1202_v63 }
 0x199   : > { %v1103_v57 = vcombine.low %v1078_v50, %v1086_v51  ;;  %v1104_v59 = vcombine.high %v1078_v50, %v1086_v51  ;;  %v1119_v60 = vcombine.low %v1094_v53, %v1102_v54  ;;  %v1120_v61 = vcombine.high %v1094_v53, %v1102_v54 }
 0x19a   : > { %5478 = vmatpush3.xpose.msk.msra.mxu0 %vm1275_vm1, %v1203_v55  ;;  %5483 = vmatpush3.xpose.msk.msra.mxu1 %vm1275_vm1, %v1204_v56  ;;  %v6213_v41 = vsub.s32 2, %v6106_v28 }
 0x19b   : > { %5487 = vmatprep.subr.mxu0 %v5871_v22  ;;  %5492 = vmatprep.subr.mxu1 %v5871_v22  ;;  %v1111_v1 = vrot.slane %v1103_v57, %v6152_v58  ;;  %v1127_v2 = vrot.slane %v1119_v60, %v6152_v58  ;;  %v1118_v5 = vrot.slane %v1104_v59, %v6152_v58 }
 0x19c   : > { %v1134_v6 = vrot.slane %v1120_v61, %v6152_v58  ;;  %v624_v43 = vrot.slane %v6118_v31, %v6213_v41 }
 0x19d   : > { %v1135_v3 = vcombine.low %v1111_v1, %v1127_v2  ;;  %v1136_v4 = vcombine.high %v1111_v1, %v1127_v2 }
 0x19e   : > { %v1137_v9 = vcombine.low %v1118_v5, %v1134_v6  ;;  %v1138_v10 = vcombine.high %v1118_v5, %v1134_v6  ;;  %v832_v44 = vadd.f32 %v831_v11, %v624_v43 }
 0x19f   : > { %5480 = vmatmul.mubr.msk.f32.vlgmr.msra.gmra.mxu0 %vm1275_vm1, %v1135_v3  ;;  %5485 = vmatmul.mubr.msk.f32.vlgmr.msra.gmra.mxu1 %vm1275_vm1, %v1136_v4 }
 0x1a0   : > { %5488 = vmatpush3.xpose.msk.msra.mxu0 %vm1275_vm1, %v1205_v7  ;;  %5493 = vmatpush3.xpose.msk.msra.mxu1 %vm1275_vm1, %v1206_v8 }
 0x1a1   : > { %5489 = vmatprep.mubr.msk.f32.mxu0 %vm5873_vm0, %v5871_v22  ;;  %5494 = vmatprep.mubr.msk.f32.mxu1 %vm5873_vm0, %v5871_v22 }
 0x1a2   : > { %5497 = vmatprep.subr.bf16.mxu0 %v5871_v22  ;;  %5503 = vmatprep.subr.bf16.mxu1 %v5871_v22 }
 0x1a3   : > { %5490 = vmatmul.mubr.msk.f32.vlgmr.msra.gmra.mxu0 %vm1275_vm1, %v1137_v9  ;;  %5495 = vmatmul.mubr.msk.f32.vlgmr.msra.gmra.mxu1 %vm1275_vm1, %v1138_v10 }
 0x1a4   : > { %5499 = vmatprep.mubr.msk.bf16.mxu0 %vm5873_vm0, %v5871_v22  ;;  %5505 = vmatprep.mubr.msk.bf16.mxu1 %vm5873_vm0, %v5871_v22 }
 0x25f   : > { %v1348_v15 = vpop.f32.mrf.mxu0  ;;  %v1424_v16 = vpop.f32.mrf.mxu1 }
 0x260   : > { %v1580_v18 = vmul.f32 0.17677669, %v1348_v15  ;;  %v1581_v20 = vmul.f32 0.17677669, %v1424_v16 }
 0x261   : > { %v5481_v21 = vpop.f32.mrf.mxu0  ;;  %v5486_v23 = vpop.f32.mrf.mxu1 }
 0x262   : > { %v1586_v24 = vadd.f32 %v1584_v17, %v1581_v20  ;;  %v1585_v25 = vadd.f32 %v1584_v17, %v1580_v18 }
 0x263   : > { %v1500_v26 = vpop.f32.mrf.mxu0  ;;  %v1576_v27 = vpop.f32.mrf.mxu1 }
 0x264   : > { %v1582_v29 = vmul.f32 0.17677669, %v1500_v26  ;;  %v1583_v33 = vmul.f32 0.17677669, %v1576_v27  ;;  %v1593_v34 = vsel %vm1589_vm2, %v1586_v24, -inf  ;;  %v1590_v35 = vsel %vm1589_vm2, %v1585_v25, -inf }
 0x265   : > { %1594 = vmax.xlane.f32.xlu1 %v1593_v34  ;;  %v5496_v36 = vpop.f32.mrf.mxu1  ;;  %1591 = vmax.xlane.f32.xlu0 %v1590_v35  ;;  %v5491_v37 = vpop.f32.mrf.mxu0 }
 0x266   : > { %v1587_v38 = vadd.f32 %v1584_v17, %v1582_v29  ;;  %v1588_v40 = vadd.f32 %v1584_v17, %v1583_v33 }
 0x268   : > { %v1596_v39 = vsel %vm1589_vm2, %v1587_v38, -inf  ;;  %v1599_v42 = vsel %vm1589_vm2, %v1588_v40, -inf }
 0x269   : > { %1597 = vmax.xlane.f32.xlu0 %v1596_v39 }
 0x26d   : > { %1600 = vmax.xlane.f32.xlu0 %v1599_v42 }
 0x276   : > { %994 = vrot.lane.b32.xlu1 %v832_v44, %s5872_s1 }
 0x2ee   : > { %v1595_v45 = vpop.xlane.xlu1 %1594  ;;  %v1592_v46 = vpop.xlane.xlu0 %1591 }
 0x2ef   : > { %v1603_v47 = vsub.f32 %v1586_v24, %v1595_v45  ;;  %v1602_v48 = vsub.f32 %v1585_v25, %v1592_v46 }
 0x2f1   : > { %v1608_v49 = vmul.f32 1.442695, %v1603_v47  ;;  %v1606_v50 = vmul.f32 1.442695, %v1602_v48 }
 0x2f2   : > { %v1598_v55 = vpop.xlane.xlu0 %1597  ;;  %v995_v3 = vpop.permute.xlu1 %994 }
 0x2f3   : > { %5777 = vpow2.f32 %v1608_v49  ;;  %v1604_v59 = vsub.f32 %v1587_v38, %v1598_v55 }
 0x2f4   : > { %5779 = vpow2.f32 %v1606_v50 }
 0x2f5   : > { %v1610_v61 = vmul.f32 1.442695, %v1604_v59 }
 0x2f6   : > { %v1601_v56 = vpop.xlane.xlu0 %1600 }
 0x2f7   : > { %v1605_v57 = vsub.f32 %v1588_v40, %v1601_v56 }
 0x2f9   : > { %v1612_v60 = vmul.f32 1.442695, %v1605_v57 }
 0x2fb   : > { %5781 = vpow2.f32 %v1612_v60 }
 0x2fc   : > { %5783 = vpow2.f32 %v1610_v61 }
 0x300   : > { %v6219_v51 = vpop.eup %5777 }
 0x301   : > { %v6221_v53 = vpop.eup %5779  ;;  %v1617_v54 = vsel %vm1589_vm2, %v6219_v51, 0.0 }
 0x302   : > { %v1614_v31 = vsel %vm1589_vm2, %v6221_v53, 0.0  ;;  %1618 = vadd.xlane.f32.xlu0 %v1617_v54 }
 0x303   : > { %1615 = vadd.xlane.f32.xlu1 %v1614_v31 }
 0x308   : > { %v6229_v62 = vpop.eup %5781 }
 0x309   : > { %v6231_v63 = vpop.eup %5783  ;;  %v1623_v1 = vsel %vm1589_vm2, %v6229_v62, 0.0 }
 0x30a   : > { %v1620_v2 = vsel %vm1589_vm2, %v6231_v63, 0.0 }
 0x314   : > { %1000 = vrot.lane.b32.xlu1 %v832_v44, %s5874_s20 }
 0x318   : > { %997 = vrot.lane.b32.xlu0 %v832_v44, %s5875_s21 }
 0x337   : > { %1624 = vadd.xlane.f32.xlu0 %v1623_v1 }
 0x338   : > { %1621 = vadd.xlane.f32.xlu1 %v1620_v2 }
 0x38b   : > { %v1619_v4 = vpop.xlane.xlu0 %1618 }
 0x38c   : > { %v1616_v5 = vpop.xlane.xlu1 %1615  ;;  %5785 = vrcp.f32 %v1619_v4 }
 0x38d   : > { %5787 = vrcp.f32 %v1616_v5 }
 0x38f   : > { %v998_v6 = vpop.permute.xlu0 %997 }
 0x390   : > { %v1001_v7 = vpop.permute.xlu1 %1000  ;;  %v1003_v8 = vcombine.low %v832_v44, %v998_v6  ;;  %v1004_v9 = vcombine.high %v832_v44, %v998_v6 }
 0x391   : > { %v1019_v10 = vcombine.low %v995_v3, %v1001_v7  ;;  %v1020_v11 = vcombine.high %v995_v3, %v1001_v7 }
 0x392   : > { %v1011_v12 = vrot.slane %v1003_v8, %v6149_v52  ;;  %v1018_v13 = vrot.slane %v1004_v9, %v6149_v52 }
 0x393   : > { %v1027_v14 = vrot.slane %v1019_v10, %v6149_v52  ;;  %v1034_v15 = vrot.slane %v1020_v11, %v6149_v52 }
 0x395   : > { %v1035_v16 = vcombine.low %v1011_v12, %v1027_v14  ;;  %v1036_v17 = vcombine.high %v1011_v12, %v1027_v14  ;;  %v1051_v18 = vcombine.low %v1018_v13, %v1034_v15  ;;  %v1052_v20 = vcombine.high %v1018_v13, %v1034_v15  ;;  %v5633_v13 = vld [vmem:[%s6479_s5 + $0x38] sm:$0xff]   ;;  %v5636_v14 = vld [vmem:[%s6479_s5 + $0x20] sm:$0xff]  }
 0x396   : > { %v5637_v15 = vld [vmem:[%s6479_s5 + $0x18] sm:$0xff]  }
 0x397   : > { %v1043_v21 = vrot.slane %v1035_v16, %v6152_v58  ;;  %v1050_v23 = vrot.slane %v1036_v17, %v6152_v58  ;;  %v1059_v24 = vrot.slane %v1051_v18, %v6152_v58  ;;  %v1066_v25 = vrot.slane %v1052_v20, %v6152_v58  ;;  %v5638_v16 = vld [vmem:[%s6479_s5 + $0x10] sm:$0xff]  }
 0x399   : > { %v1207_v26 = vcombine.low %v1043_v21, %v1050_v23  ;;  %v4941_v27 = vcombine.high %v1043_v21, %v1050_v23  ;;  %v1223_v29 = vcombine.low %v1059_v24, %v1066_v25  ;;  %v4942_v33 = vcombine.high %v1059_v24, %v1066_v25  ;;  %v5786_v43 = vpop.eup %5785 }
 0x39a   : > { %v5788_v48 = vpop.eup %5787  ;;  %v1631_v59 = vmul.f32 %v5786_v43, %v6219_v51 }
 0x39b   : > { %v1214_v34 = vrot.slane %v1207_v26, %v6149_v52  ;;  %v1222_v35 = vrot.slane %v4941_v27, %v6149_v52  ;;  %v1230_v36 = vrot.slane %v1223_v29, %v6149_v52  ;;  %v1238_v37 = vrot.slane %v4942_v33, %v6149_v52 }
 0x39c   : > { %v1630_v57 = vmul.f32 %v5788_v48, %v6221_v53  ;;  %v1635_v4 = vpack.c.bf16 %v1631_v59, %v1631_v59 }
 0x39d   : > { %v1239_v38 = vcombine.low %v1214_v34, %v1222_v35  ;;  %v1255_v39 = vcombine.low %v1230_v36, %v1238_v37  ;;  %v1240_v40 = vcombine.high %v1214_v34, %v1222_v35  ;;  %v1256_v42 = vcombine.high %v1230_v36, %v1238_v37 }
 0x39e   : > { %v1634_v3 = vpack.c.bf16 %v1630_v57, %v1630_v57 }
 0x39f   : > { %v1247_v44 = vrot.slane %v1239_v38, %v6152_v58  ;;  %v1263_v45 = vrot.slane %v1255_v39, %v6152_v58  ;;  %v1254_v46 = vrot.slane %v1240_v40, %v6152_v58  ;;  %v1270_v47 = vrot.slane %v1256_v42, %v6152_v58 }
 0x3a1   : > { %v1271_v49 = vcombine.low %v1247_v44, %v1263_v45  ;;  %v1272_v50 = vcombine.high %v1247_v44, %v1263_v45  ;;  %v1273_v54 = vcombine.low %v1254_v46, %v1270_v47  ;;  %v1274_v31 = vcombine.high %v1254_v46, %v1270_v47 }
 0x3a3   : > { %v1638_v55 = vpack.c.bf16 %v1271_v49, %v1271_v49  ;;  %v1639_v56 = vpack.c.bf16 %v1272_v50, %v1272_v50  ;;  %v1640_v1 = vpack.c.bf16 %v1273_v54, %v1273_v54  ;;  %v1641_v2 = vpack.c.bf16 %v1274_v31, %v1274_v31  ;;  %v5639_v54 = vld [vmem:[%s6479_s5 + $0x8] sm:$0xff]  }
 0x3a5   : > { %v1647_v60 = vsel %vm1645_vm3, %v1638_v55, 0  ;;  %v1693_v61 = vsel %vm1645_vm3, %v1639_v56, 0  ;;  %v1739_v51 = vsel %vm1645_vm3, %v1640_v1, 0  ;;  %v1785_v53 = vsel %vm1645_vm3, %v1641_v2, 0 }
 0x3a6   : > { %5498 = vmatpush3.bf16.msra.mxu0 %v1647_v60  ;;  %5504 = vmatpush3.bf16.msra.mxu1 %v1693_v61 }
 0x3a7   : > { %5509 = vmatprep.subr.bf16.mxu0 %v5871_v22  ;;  %5515 = vmatprep.subr.bf16.mxu1 %v5871_v22 }
 0x3a9   : > { %5500 = vmatmul.mubr.msk.bf16.vlgmr.msra.gmra.mxu0 %vm1589_vm2, %v1634_v3  ;;  %5506 = vmatmul.mubr.msk.bf16.vlgmr.msra.gmra.mxu1 %vm1589_vm2, %v1635_v4  ;;  %v5640_v3 = vld [vmem:[%s6479_s5] sm:$0xff]  }
 0x3aa   : > { %5510 = vmatpush3.bf16.msra.mxu0 %v1739_v51  ;;  %5516 = vmatpush3.bf16.msra.mxu1 %v1785_v53 }
 0x3ab   : > { %5511 = vmatprep.mubr.msk.bf16.mxu0 %vm5873_vm0, %v5871_v22  ;;  %5517 = vmatprep.mubr.msk.bf16.mxu1 %vm5873_vm0, %v5871_v22 }
 0x3ac   : > { %5521 = vmatprep.subr.bf16.mxu0 %v5871_v22 }
 0x3c0   : > { %v1625_v5 = vpop.xlane.xlu0 %1624 }
 0x3c1   : > { %v1622_v6 = vpop.xlane.xlu1 %1621  ;;  %5789 = vrcp.f32 %v1625_v5 }
 0x3c2   : > { %5791 = vrcp.f32 %v1622_v6 }
 0x3ce   : > { %v5790_v7 = vpop.eup %5789 }
 0x3cf   : > { %v5792_v8 = vpop.eup %5791  ;;  %v1633_v9 = vmul.f32 %v5790_v7, %v6229_v62  ;;  %v5634_v62 = vld [vmem:[%s6479_s5 + $0x30] sm:$0xff]  }
 0x3d0   : > { %v1632_v10 = vmul.f32 %v5792_v8, %v6231_v63  ;;  %v5635_v63 = vld [vmem:[%s6479_s5 + $0x28] sm:$0xff]  }
 0x3d1   : > { %v1637_v11 = vpack.c.bf16 %v1633_v9, %v1633_v9 }
 0x3d2   : > { %v1636_v12 = vpack.c.bf16 %v1632_v10, %v1632_v10 }
 0x3d3   : > { %5518 = vmatmul.mubr.msk.bf16.vlgmr.msra.gmra.mxu1 %vm1589_vm2, %v1637_v11 }
 0x3d4   : > { %5512 = vmatmul.mubr.msk.bf16.vlgmr.msra.gmra.mxu0 %vm1589_vm2, %v1636_v12  ;;  %3006 = vmatprep.mubr.bf16.mxu1 %v5870_v0 }
 0x3d5   : > { %5537 = vmatprep.mubr.msk.bf16.mxu0 %vm5873_vm0, %v5871_v22  ;;  %5522 = vmatpush3.bf16.msra.mxu0 %v5633_v13 }
 0x3d6   : > { %5523 = vmatprep.subr.bf16.mxu0 %v5871_v22 }
 0x3d9   : > { %5524 = vmatpush3.bf16.msra.mxu0 %v5634_v62 }
 0x3da   : > { %5525 = vmatprep.subr.bf16.mxu0 %v5871_v22 }
 0x3dd   : > { %5526 = vmatpush3.bf16.msra.mxu0 %v5635_v63 }
 0x3de   : > { %5527 = vmatprep.subr.bf16.mxu0 %v5871_v22 }
 0x3e1   : > { %5528 = vmatpush3.bf16.msra.mxu0 %v5636_v14 }
 0x3e2   : > { %5529 = vmatprep.subr.bf16.mxu0 %v5871_v22 }
 0x3e5   : > { %5530 = vmatpush3.bf16.msra.mxu0 %v5637_v15 }
 0x3e6   : > { %5531 = vmatprep.subr.bf16.mxu0 %v5871_v22 }
 0x3e9   : > { %5532 = vmatpush3.bf16.msra.mxu0 %v5638_v16 }
 0x3ea   : > { %5533 = vmatprep.subr.bf16.mxu0 %v5871_v22 }
 0x3ed   : > { %5534 = vmatpush3.bf16.msra.mxu0 %v5639_v54 }
 0x3ee   : > { %5535 = vmatprep.subr.bf16.mxu0 %v5871_v22 }
 0x3f1   : > { %5536 = vmatpush3.bf16.msra.mxu0 %v5640_v3 }
 0x469   : > { %v1683_v17 = vpop.f32.mrf.mxu0  ;;  %v1729_v18 = vpop.f32.mrf.mxu1 }
 0x46b   : > { %v5501_v20 = vpop.f32.mrf.mxu0  ;;  %v5507_v21 = vpop.f32.mrf.mxu1 }
 0x46d   : > { %v1686_v23 = vpop.f32.mrf.mxu0  ;;  %v1732_v24 = vpop.f32.mrf.mxu1 }
 0x46e   : > { %v4957_v23 = vld [vmem:[%s6480_s6] ss:$0 sm:$0xff] }
 0x46f   : > { %v5502_v25 = vpop.f32.mrf.mxu0  ;;  %v5508_v26 = vpop.f32.mrf.mxu1 }
 0x493   : > { %v1821_v27 = vpop.f32.mrf.mxu1 }
 0x494   : > { %v1775_v29 = vpop.f32.mrf.mxu0  ;;  %v1843_v33 = vcombine.low %v1729_v18, %v1821_v27  ;;  %v1844_v34 = vcombine.high %v1729_v18, %v1821_v27 }
 0x495   : > { %v1827_v35 = vcombine.low %v1683_v17, %v1775_v29  ;;  %v1828_v36 = vcombine.high %v1683_v17, %v1775_v29  ;;  %v5519_v37 = vpop.f32.mrf.mxu1 }
 0x496   : > { %v1851_v38 = vrot.slane %v1843_v33, %v6149_v52  ;;  %v1858_v39 = vrot.slane %v1844_v34, %v6149_v52  ;;  %v5513_v40 = vpop.f32.mrf.mxu0  ;;  %v2234_v34 = vld [vmem:[#allocation2 + $0x380] sm:$0xff] }
 0x497   : > { %v1835_v42 = vrot.slane %v1827_v35, %v6149_v52  ;;  %v1842_v43 = vrot.slane %v1828_v36, %v6149_v52  ;;  %v1824_v44 = vpop.f32.mrf.mxu1  ;;  %v2242_v35 = vld [vmem:[#allocation2 + $0x3c0] sm:$0xff]  ;;  %v2235_v36 = vld [vmem:[#allocation2 + $0x388] sm:$0xff] }
 0x498   : > { %v1778_v45 = vpop.f32.mrf.mxu0  ;;  %v5080_v37 = vcombine.low %v2234_v34, %v2242_v35  ;;  %v2218_v40 = vld [vmem:[#allocation2 + $0x300] sm:$0xff] }
 0x499   : > { %v1859_v46 = vcombine.low %v1835_v42, %v1851_v38  ;;  %v1860_v47 = vcombine.high %v1835_v42, %v1851_v38  ;;  %v1875_v48 = vcombine.low %v1842_v43, %v1858_v39  ;;  %v1876_v49 = vcombine.high %v1842_v43, %v1858_v39  ;;  %v5520_v50 = vpop.f32.mrf.mxu1  ;;  %v2243_v39 = vld [vmem:[#allocation2 + $0x3c8] sm:$0xff]  ;;  %v2226_v42 = vld [vmem:[#allocation2 + $0x340] sm:$0xff] }
 0x49a   : > { %v5514_v31 = vpop.f32.mrf.mxu0  ;;  %v5081_v38 = vcombine.high %v2234_v34, %v2242_v35  ;;  %v5082_v43 = vcombine.low %v2235_v36, %v2243_v39  ;;  %v5083_v44 = vcombine.high %v2235_v36, %v2243_v39  ;;  %v5065_v45 = vcombine.high %v2218_v40, %v2226_v42  ;;  %v2122_v36 = vld [vmem:[#allocation2] sm:$0xff] }
 0x49b   : > { %v1867_v55 = vrot.slane %v1859_v46, %v6152_v58  ;;  %v1874_v56 = vrot.slane %v1860_v47, %v6152_v58  ;;  %v1883_v57 = vrot.slane %v1875_v48, %v6152_v58  ;;  %v1890_v59 = vrot.slane %v1876_v49, %v6152_v58  ;;  %v2219_v46 = vld [vmem:[#allocation2 + $0x308] sm:$0xff] }
 0x49c   : > { %v2227_v47 = vld [vmem:[#allocation2 + $0x348] sm:$0xff]  ;;  %2974 = vmatprep.subr.bf16.mxu1 %v5081_v38  ;;  %3015 = vmatprep.subr.bf16.mxu0 %v5083_v44 }
 0x49d   : > { %v1895_v60 = vcombine.low %v1867_v55, %v1874_v56  ;;  %v4955_v61 = vcombine.high %v1867_v55, %v1874_v56  ;;  %v1911_v1 = vcombine.low %v1883_v57, %v1890_v59  ;;  %v4956_v2 = vcombine.high %v1883_v57, %v1890_v59  ;;  %2975 = vmatpush1.bf16.msra.mxu1 %v5080_v37  ;;  %v2202_v56 = vld [vmem:[#allocation2 + $0x280] sm:$0xff]  ;;  %v2203_v59 = vld [vmem:[#allocation2 + $0x288] sm:$0xff] }
 0x49e   : > { %v5067_v48 = vcombine.high %v2219_v46, %v2227_v47  ;;  %2976 = vmatprep.subr.bf16.mxu1 %v5065_v45  ;;  %v5066_v49 = vcombine.low %v2219_v46, %v2227_v47  ;;  %v2210_v57 = vld [vmem:[#allocation2 + $0x2c0] sm:$0xff]  ;;  %v2123_v38 = vld [vmem:[#allocation2 + $0x8] sm:$0xff]  ;;  %v2236_v45 = vld [vmem:[#allocation2 + $0x390] sm:$0xff] }
 0x49f   : > { %v1902_v4 = vrot.slane %v1895_v60, %v6149_v52  ;;  %v1910_v51 = vrot.slane %v4955_v61, %v6149_v52  ;;  %v1918_v53 = vrot.slane %v1911_v1, %v6149_v52  ;;  %v1926_v5 = vrot.slane %v4956_v2, %v6149_v52  ;;  %v2211_v61 = vld [vmem:[#allocation2 + $0x2c8] sm:$0xff]  ;;  %v2130_v37 = vld [vmem:[#allocation2 + $0x40] sm:$0xff]  ;;  %v2244_v46 = vld [vmem:[#allocation2 + $0x3d0] sm:$0xff] }
 0x4a0   : > { %v5049_v60 = vcombine.high %v2202_v56, %v2210_v57  ;;  %v5048_v1 = vcombine.low %v2202_v56, %v2210_v57  ;;  %v5050_v2 = vcombine.low %v2203_v59, %v2211_v61  ;;  %v5051_v3 = vcombine.high %v2203_v59, %v2211_v61  ;;  %v2237_v47 = vld [vmem:[#allocation2 + $0x398] sm:$0xff] }
 0x4a1   : > { %v1928_v6 = vcombine.high %v1902_v4, %v1910_v51  ;;  %v1944_v7 = vcombine.high %v1918_v53, %v1926_v5  ;;  %v1927_v8 = vcombine.low %v1902_v4, %v1910_v51  ;;  %v1943_v9 = vcombine.low %v1918_v53, %v1926_v5  ;;  %v2186_v4 = vld [vmem:[#allocation2 + $0x200] sm:$0xff]  ;;  %v2187_v53 = vld [vmem:[#allocation2 + $0x208] sm:$0xff] }
 0x4a2   : > { %v2194_v51 = vld [vmem:[#allocation2 + $0x240] sm:$0xff]  ;;  %v4969_v39 = vcombine.high %v2122_v36, %v2130_v37 }
 0x4a3   : > { %v1942_v10 = vrot.slane %v1928_v6, %v6152_v58  ;;  %v1958_v11 = vrot.slane %v1944_v7, %v6152_v58  ;;  %v1935_v12 = vrot.slane %v1927_v8, %v6152_v58  ;;  %v1951_v13 = vrot.slane %v1943_v9, %v6152_v58  ;;  %v2195_v6 = vld [vmem:[#allocation2 + $0x248] sm:$0xff] }
 0x4a4   : > { %v5033_v5 = vcombine.high %v2186_v4, %v2194_v51  ;;  %v5032_v7 = vcombine.low %v2186_v4, %v2194_v51  ;;  %v5034_v8 = vcombine.low %v2187_v53, %v2195_v6  ;;  %v5035_v9 = vcombine.high %v2187_v53, %v2195_v6  ;;  %v2228_v4 = vld [vmem:[#allocation2 + $0x350] sm:$0xff]  ;;  %v2221_v51 = vld [vmem:[#allocation2 + $0x318] sm:$0xff] }
 0x4a5   : > { %v1961_v62 = vcombine.low %v1942_v10, %v1958_v11  ;;  %v1960_v63 = vcombine.high %v1935_v12, %v1951_v13  ;;  %v1959_v14 = vcombine.low %v1935_v12, %v1951_v13  ;;  %v1962_v52 = vcombine.high %v1942_v10, %v1958_v11  ;;  %v2170_v10 = vld [vmem:[#allocation2 + $0x180] sm:$0xff]  ;;  %v2171_v12 = vld [vmem:[#allocation2 + $0x188] sm:$0xff]  ;;  %v2229_v53 = vld [vmem:[#allocation2 + $0x358] sm:$0xff] }
 0x4a6   : > { %v2178_v11 = vld [vmem:[#allocation2 + $0x1c0] sm:$0xff] }
 0x4a7   : > { %1968 = vrot.lane.b32.xlu1 %v1961_v62, %s5875_s21  ;;  %1964 = vrot.lane.b32.xlu0 %v1960_v63, %s5874_s20  ;;  %v5017_v13 = vcombine.high %v2170_v10, %v2178_v11  ;;  %v2179_v62 = vld [vmem:[#allocation2 + $0x1c8] sm:$0xff]  ;;  %v5016_v63 = vcombine.low %v2170_v10, %v2178_v11  ;;  %v2212_v10 = vld [vmem:[#allocation2 + $0x2d0] sm:$0xff]  ;;  %v2213_v11 = vld [vmem:[#allocation2 + $0x2d8] sm:$0xff] }
 0x4ab   : > { %1972 = vrot.lane.b32.xlu1 %v1962_v52, %s5872_s1  ;;  %v5019_v52 = vcombine.high %v2171_v12, %v2179_v62 }
 0x519   : > { %v1969_v15 = vpop.permute.xlu1 %1968  ;;  %v1965_v16 = vpop.permute.xlu0 %1964 }
 0x51a   : > { %v1975_v17 = vsel %vm1275_vm1, %v1959_v14, %v1965_v16  ;;  %v5018_v14 = vcombine.low %v2171_v12, %v2179_v62  ;;  %v2162_v16 = vld [vmem:[#allocation2 + $0x140] sm:$0xff] }
 0x51b   : > { %v1977_v20 = vsel %vm1976_vm4, %v1975_v17, %v1969_v15  ;;  %v2154_v15 = vld [vmem:[#allocation2 + $0x100] sm:$0xff]  ;;  %v2155_v17 = vld [vmem:[#allocation2 + $0x108] sm:$0xff] }
 0x51d   : > { %v1973_v18 = vpop.permute.xlu1 %1972 }
 0x51e   : > { %v1979_v21 = vsel %vm1978_vm5, %v1977_v20, %v1973_v18  ;;  %v5001_v18 = vcombine.high %v2154_v15, %v2162_v16  ;;  %v2163_v20 = vld [vmem:[#allocation2 + $0x148] sm:$0xff] }
 0x51f   : > { %v1980_v58 = vpack.c.bf16 %v1979_v21, %v1979_v21  ;;  %v5000_v21 = vcombine.low %v2154_v15, %v2162_v16  ;;  %v2189_v15 = vld [vmem:[#allocation2 + $0x218] sm:$0xff] }
 0x520   : > { %v2197_v16 = vld [vmem:[#allocation2 + $0x258] sm:$0xff] }
 0x521   : > { %5538 = vmatmul.mubr.bf16.vlgmr.msra.gmra.mxu0 %v1980_v58  ;;  %v5002_v58 = vcombine.low %v2155_v17, %v2163_v20 }
 0x522   : > { %3047 = vmatprep.mubr.bf16.mxu0 %v5870_v0  ;;  %3016 = vmatpush1.bf16.msra.mxu0 %v5082_v43 }
 0x523   : > { %3017 = vmatprep.subr.bf16.mxu0 %v5067_v48  ;;  %v5084_v48 = vcombine.low %v2236_v45, %v2244_v46 }
 0x526   : > { %3018 = vmatpush1.bf16.msra.mxu0 %v5066_v49  ;;  %v2245_v49 = vld [vmem:[#allocation2 + $0x3d8] sm:$0xff] }
 0x527   : > { %3019 = vmatprep.subr.bf16.mxu0 %v5051_v3  ;;  %v2220_v3 = vld [vmem:[#allocation2 + $0x310] sm:$0xff] }
 0x528   : > { %v5068_v12 = vcombine.low %v2220_v3, %v2228_v4 }
 0x52a   : > { %3020 = vmatpush1.bf16.msra.mxu0 %v5050_v2 }
 0x52b   : > { %3021 = vmatprep.subr.bf16.mxu0 %v5035_v9  ;;  %v2204_v9 = vld [vmem:[#allocation2 + $0x290] sm:$0xff] }
 0x52c   : > { %v5053_v62 = vcombine.high %v2204_v9, %v2212_v10 }
 0x52e   : > { %3022 = vmatpush1.bf16.msra.mxu0 %v5034_v8  ;;  %v5071_v8 = vcombine.high %v2221_v51, %v2229_v53 }
 0x52f   : > { %3023 = vmatprep.subr.bf16.mxu0 %v5019_v52  ;;  %v2196_v52 = vld [vmem:[#allocation2 + $0x250] sm:$0xff] }
 0x532   : > { %3024 = vmatpush1.bf16.msra.mxu0 %v5018_v14  ;;  %v2188_v14 = vld [vmem:[#allocation2 + $0x210] sm:$0xff] }
 0x5e1   : > { %v2086_v24 = vpop.f32.mrf.mxu0 }
 0x5e2   : > { %v2087_v25 = vadd.f32 %v4957_v23, %v2086_v24  ;;  %v5003_v23 = vcombine.high %v2155_v17, %v2163_v20  ;;  %v2138_v24 = vld [vmem:[#allocation2 + $0x80] sm:$0xff]  ;;  %v5052_v17 = vcombine.low %v2204_v9, %v2212_v10  ;;  %v5037_v20 = vcombine.high %v2188_v14, %v2196_v52 }
 0x5e3   : > { %v5539_v26 = vpop.f32.mrf.mxu0  ;;  %v2222_v9 = vld [vmem:[#allocation2 + $0x320] sm:$0xff] }
 0x5e4   : > { %v2092_v27 = vadd.f32 %v2087_v25, %v6081_v19  ;;  %v5064_v19 = vcombine.low %v2218_v40, %v2226_v42  ;;  %3025 = vmatprep.subr.bf16.mxu0 %v5003_v23  ;;  %v2146_v25 = vld [vmem:[#allocation2 + $0xc0] sm:$0xff]  ;;  %v2139_v26 = vld [vmem:[#allocation2 + $0x88] sm:$0xff]  ;;  %v4968_v42 = vcombine.low %v2122_v36, %v2130_v37  ;;  %v2180_v23 = vld [vmem:[#allocation2 + $0x1d0] sm:$0xff] }
 0x5e5   : > { %v2089_v29 = vpop.f32.mrf.mxu0  ;;  %3026 = vmatpush1.bf16.msra.mxu0 %v5002_v58  ;;  %v2131_v40 = vld [vmem:[#allocation2 + $0x48] sm:$0xff]  ;;  %v2172_v58 = vld [vmem:[#allocation2 + $0x190] sm:$0xff]  ;;  %v2157_v36 = vld [vmem:[#allocation2 + $0x118] sm:$0xff] }
 0x5e6   : > { %2095 = vadd.xlane.f32.xlu0 %v2092_v27  ;;  %2977 = vmatpush1.bf16.msra.mxu1 %v5064_v19  ;;  %v2147_v29 = vld [vmem:[#allocation2 + $0xc8] sm:$0xff]  ;;  %v4970_v43 = vcombine.low %v2123_v38, %v2131_v40  ;;  %v4971_v44 = vcombine.high %v2123_v38, %v2131_v40  ;;  %v5085_v19 = vcombine.high %v2236_v45, %v2244_v46  ;;  %v2165_v37 = vld [vmem:[#allocation2 + $0x158] sm:$0xff]  ;;  %v2230_v10 = vld [vmem:[#allocation2 + $0x360] sm:$0xff] }
 0x5e7   : > { %v5540_v33 = vpop.f32.mrf.mxu0  ;;  %2978 = vmatprep.subr.bf16.mxu1 %v5049_v60  ;;  %v4986_v34 = vcombine.low %v2139_v26, %v2147_v29  ;;  %v4987_v35 = vcombine.high %v2139_v26, %v2147_v29  ;;  %v4966_v60 = vld [vmem:[%s6481_s7] ss:$0 sm:$0xff]  ;;  %v5036_v26 = vcombine.low %v2188_v14, %v2196_v52  ;;  %v5021_v29 = vcombine.high %v2172_v58, %v2180_v23  ;;  %v2141_v45 = vld [vmem:[#allocation2 + $0x98] sm:$0xff] }
 0x5e8   : > { %v4984_v33 = vcombine.low %v2138_v24, %v2146_v25  ;;  %v5020_v38 = vcombine.low %v2172_v58, %v2180_v23  ;;  %v2149_v46 = vld [vmem:[#allocation2 + $0xd8] sm:$0xff]  ;;  %v2206_v14 = vld [vmem:[#allocation2 + $0x2a0] sm:$0xff] }
 0x5e9   : > { %3027 = vmatprep.subr.bf16.mxu0 %v4987_v35  ;;  %v2164_v35 = vld [vmem:[#allocation2 + $0x150] sm:$0xff]  ;;  %v2214_v52 = vld [vmem:[#allocation2 + $0x2e0] sm:$0xff] }
 0x5ea   : > { %2979 = vmatpush1.bf16.msra.mxu1 %v5048_v1  ;;  %3028 = vmatpush1.bf16.msra.mxu0 %v4986_v34  ;;  %v4967_v1 = vld [vmem:[%s6482_s8] ss:$0 sm:$0xff]  ;;  %v2156_v34 = vld [vmem:[#allocation2 + $0x110] sm:$0xff] }
 0x5eb   : > { %2980 = vmatprep.subr.bf16.mxu1 %v5033_v5  ;;  %3029 = vmatprep.subr.bf16.mxu0 %v4971_v44  ;;  %v5005_v40 = vcombine.high %v2156_v34, %v2164_v35  ;;  %v2148_v44 = vld [vmem:[#allocation2 + $0xd0] sm:$0xff]  ;;  %v2190_v58 = vld [vmem:[#allocation2 + $0x220] sm:$0xff] }
 0x5ec   : > { %v2198_v23 = vld [vmem:[#allocation2 + $0x260] sm:$0xff] }
 0x5ee   : > { %2981 = vmatpush1.bf16.msra.mxu1 %v5032_v7  ;;  %3030 = vmatpush1.bf16.msra.mxu0 %v4970_v43  ;;  %v5069_v7 = vcombine.high %v2220_v3, %v2228_v4  ;;  %v2140_v43 = vld [vmem:[#allocation2 + $0x90] sm:$0xff]  ;;  %v2239_v3 = vld [vmem:[#allocation2 + $0x3a8] sm:$0xff] }
 0x5ef   : > { %2982 = vmatprep.subr.bf16.mxu1 %v5017_v13  ;;  %v5070_v13 = vcombine.low %v2221_v51, %v2229_v53  ;;  %v2247_v4 = vld [vmem:[#allocation2 + $0x3e8] sm:$0xff] }
 0x5f2   : > { %2983 = vmatpush1.bf16.msra.mxu1 %v5016_v63 }
 0x5f3   : > { %2984 = vmatprep.subr.bf16.mxu1 %v5001_v18 }
 0x5f6   : > { %2985 = vmatpush1.bf16.msra.mxu1 %v5000_v21  ;;  %v5039_v21 = vcombine.high %v2189_v15, %v2197_v16 }
 0x66f   : > { %v2096_v50 = vpop.xlane.xlu0 %2095 }
 0x670   : > { %v2098_v54 = vmul.f32 0.0078125, %v2096_v50  ;;  %v5086_v50 = vcombine.low %v2237_v47, %v2245_v49 }
 0x672   : > { %v6331_v31 = vsub.f32 %v2092_v27, %v2098_v54  ;;  %v4985_v27 = vcombine.high %v2138_v24, %v2146_v25  ;;  %v5087_v54 = vcombine.high %v2237_v47, %v2245_v49  ;;  %v2173_v24 = vld [vmem:[#allocation2 + $0x198] sm:$0xff]  ;;  %v5004_v47 = vcombine.low %v2156_v34, %v2164_v35  ;;  %v2174_v34 = vld [vmem:[#allocation2 + $0x1a0] sm:$0xff] }
 0x673   : > { %v2181_v25 = vld [vmem:[#allocation2 + $0x1d8] sm:$0xff]  ;;  %v4991_v49 = vcombine.high %v2141_v45, %v2149_v46  ;;  %v2182_v35 = vld [vmem:[#allocation2 + $0x1e0] sm:$0xff] }
 0x674   : > { %v2100_v55 = vmul.f32 %v6331_v31, %v6331_v31  ;;  %2986 = vmatprep.subr.bf16.mxu1 %v4985_v27  ;;  %3097 = vmatprep.subr.bf16.mxu0 %v5087_v54  ;;  %v5038_v27 = vcombine.low %v2189_v15, %v2197_v16  ;;  %v2132_v54 = vld [vmem:[#allocation2 + $0x50] sm:$0xff]  ;;  %v2207_v15 = vld [vmem:[#allocation2 + $0x2a8] sm:$0xff] }
 0x675   : > { %2987 = vmatpush1.bf16.msra.mxu1 %v4984_v33  ;;  %v5023_v33 = vcombine.high %v2173_v24, %v2181_v25  ;;  %v2215_v16 = vld [vmem:[#allocation2 + $0x2e8] sm:$0xff] }
 0x676   : > { %2101 = vadd.xlane.f32.xlu1 %v2100_v55  ;;  %2988 = vmatprep.subr.bf16.mxu1 %v4969_v39  ;;  %v5022_v39 = vcombine.low %v2173_v24, %v2181_v25  ;;  %v2191_v24 = vld [vmem:[#allocation2 + $0x228] sm:$0xff] }
 0x677   : > { %v2199_v25 = vld [vmem:[#allocation2 + $0x268] sm:$0xff] }
 0x679   : > { %2989 = vmatpush1.bf16.msra.mxu1 %v4968_v42  ;;  %v5007_v42 = vcombine.high %v2157_v36, %v2165_v37 }
 0x67a   : > { %3056 = vmatprep.subr.bf16.mxu1 %v5085_v19  ;;  %v4989_v19 = vcombine.high %v2140_v43, %v2148_v44 }
 0x6ff   : > { %v2102_v55 = vpop.xlane.xlu1 %2101 }
 0x700   : > { %v2103_v56 = vmul.f32 0.0078125, %v2102_v55  ;;  %v2125_v55 = vld [vmem:[#allocation2 + $0x18] sm:$0xff] }
 0x702   : > { %v2104_v57 = vadd.f32 1e-05, %v2103_v56  ;;  %v2133_v56 = vld [vmem:[#allocation2 + $0x58] sm:$0xff] }
 0x703   : > { %v4974_v53 = vcombine.low %v2125_v55, %v2133_v56 }
 0x704   : > { %5793 = vrsqrt.f32 %v2104_v57  ;;  %v4988_v57 = vcombine.low %v2140_v43, %v2148_v44  ;;  %v2158_v43 = vld [vmem:[#allocation2 + $0x120] sm:$0xff] }
 0x705   : > { %v2166_v44 = vld [vmem:[#allocation2 + $0x160] sm:$0xff] }
 0x711   : > { %v5794_v59 = vpop.eup %5793 }
 0x712   : > { %v2106_v61 = vmul.f32 %v5794_v59, %v6331_v31  ;;  %v2205_v31 = vld [vmem:[#allocation2 + $0x298] sm:$0xff]  ;;  %v4990_v59 = vcombine.low %v2141_v45, %v2149_v46  ;;  %v2159_v45 = vld [vmem:[#allocation2 + $0x128] sm:$0xff] }
 0x713   : > { %v5055_v63 = vcombine.high %v2205_v31, %v2213_v11  ;;  %v5054_v18 = vcombine.low %v2205_v31, %v2213_v11  ;;  %v2223_v31 = vld [vmem:[#allocation2 + $0x328] sm:$0xff] }
 0x714   : > { %v2113_v2 = vmul.f32 %v4966_v60, %v2106_v61  ;;  %v4975_v61 = vcombine.high %v2125_v55, %v2133_v56  ;;  %v2231_v11 = vld [vmem:[#allocation2 + $0x368] sm:$0xff] }
 0x715   : > { %v2167_v46 = vld [vmem:[#allocation2 + $0x168] sm:$0xff] }
 0x716   : > { %v6342_v5 = vadd.f32 %v4967_v1, %v2113_v2  ;;  %v2238_v1 = vld [vmem:[#allocation2 + $0x3a0] sm:$0xff]  ;;  %v2143_v55 = vld [vmem:[#allocation2 + $0xa8] sm:$0xff] }
 0x717   : > { %v2246_v2 = vld [vmem:[#allocation2 + $0x3e0] sm:$0xff]  ;;  %v2151_v56 = vld [vmem:[#allocation2 + $0xe8] sm:$0xff] }
 0x718   : > { %v6346_v6 = vpack.c.bf16 %v6342_v5, %v6342_v5 }
 0x71a   : > { %3007 = vmatmul.mubr.bf16.vlgmr.msra.gmra.mxu1 %v6346_v6  ;;  %3048 = vmatmul.mubr.bf16.vlgmr.msra.gmra.mxu0 %v6346_v6 }
 0x71b   : > { %3057 = vmatpush1.bf16.msra.mxu1 %v5084_v48  ;;  %3098 = vmatpush1.bf16.msra.mxu0 %v5086_v50  ;;  %v5006_v48 = vcombine.low %v2157_v36, %v2165_v37  ;;  %v2124_v50 = vld [vmem:[#allocation2 + $0x10] sm:$0xff]  ;;  %v2175_v36 = vld [vmem:[#allocation2 + $0x1a8] sm:$0xff] }
 0x71c   : > { %3058 = vmatprep.subr.bf16.mxu1 %v5069_v7  ;;  %3099 = vmatprep.subr.bf16.mxu0 %v5071_v8  ;;  %v4973_v60 = vcombine.high %v2124_v50, %v2132_v54  ;;  %v4972_v51 = vcombine.low %v2124_v50, %v2132_v54  ;;  %v5089_v7 = vcombine.high %v2238_v1, %v2246_v2  ;;  %v2183_v37 = vld [vmem:[#allocation2 + $0x1e8] sm:$0xff]  ;;  %v2142_v50 = vld [vmem:[#allocation2 + $0xa0] sm:$0xff] }
 0x71d   : > { %3088 = vmatprep.mubr.bf16.mxu1 %v5870_v0  ;;  %3129 = vmatprep.mubr.bf16.mxu0 %v5870_v0  ;;  %v5091_v8 = vcombine.high %v2239_v3, %v2247_v4  ;;  %v2150_v54 = vld [vmem:[#allocation2 + $0xe0] sm:$0xff] }
 0x71f   : > { %3059 = vmatpush1.bf16.msra.mxu1 %v5068_v12  ;;  %3100 = vmatpush1.bf16.msra.mxu0 %v5070_v13  ;;  %v5088_v12 = vcombine.low %v2238_v1, %v2246_v2  ;;  %v5090_v13 = vcombine.low %v2239_v3, %v2247_v4  ;;  %v2126_v1 = vld [vmem:[#allocation2 + $0x20] sm:$0xff]  ;;  %v2127_v3 = vld [vmem:[#allocation2 + $0x28] sm:$0xff] }
 0x720   : > { %3060 = vmatprep.subr.bf16.mxu1 %v5053_v62  ;;  %3101 = vmatprep.subr.bf16.mxu0 %v5055_v63  ;;  %v5073_v62 = vcombine.high %v2222_v9, %v2230_v10  ;;  %v5075_v63 = vcombine.high %v2223_v31, %v2231_v11  ;;  %v2134_v2 = vld [vmem:[#allocation2 + $0x60] sm:$0xff]  ;;  %v2135_v4 = vld [vmem:[#allocation2 + $0x68] sm:$0xff] }
 0x723   : > { %3061 = vmatpush1.bf16.msra.mxu1 %v5052_v17  ;;  %3102 = vmatpush1.bf16.msra.mxu0 %v5054_v18  ;;  %v5072_v17 = vcombine.low %v2222_v9, %v2230_v10  ;;  %v5074_v18 = vcombine.low %v2223_v31, %v2231_v11  ;;  %v2240_v9 = vld [vmem:[#allocation2 + $0x3b0] sm:$0xff]  ;;  %v2241_v31 = vld [vmem:[#allocation2 + $0x3b8] sm:$0xff] }
 0x724   : > { %3062 = vmatprep.subr.bf16.mxu1 %v5037_v20  ;;  %3103 = vmatprep.subr.bf16.mxu0 %v5039_v21  ;;  %v5057_v20 = vcombine.high %v2206_v14, %v2214_v52  ;;  %v5059_v21 = vcombine.high %v2207_v15, %v2215_v16  ;;  %v2248_v10 = vld [vmem:[#allocation2 + $0x3f0] sm:$0xff]  ;;  %v2249_v11 = vld [vmem:[#allocation2 + $0x3f8] sm:$0xff] }
 0x727   : > { %3063 = vmatpush1.bf16.msra.mxu1 %v5036_v26  ;;  %3104 = vmatpush1.bf16.msra.mxu0 %v5038_v27  ;;  %v5056_v26 = vcombine.low %v2206_v14, %v2214_v52  ;;  %v5058_v27 = vcombine.low %v2207_v15, %v2215_v16  ;;  %v2224_v14 = vld [vmem:[#allocation2 + $0x330] sm:$0xff]  ;;  %v2225_v15 = vld [vmem:[#allocation2 + $0x338] sm:$0xff] }
 0x728   : > { %3064 = vmatprep.subr.bf16.mxu1 %v5021_v29  ;;  %3105 = vmatprep.subr.bf16.mxu0 %v5023_v33  ;;  %v5041_v29 = vcombine.high %v2190_v58, %v2198_v23  ;;  %v5043_v33 = vcombine.high %v2191_v24, %v2199_v25  ;;  %v2232_v52 = vld [vmem:[#allocation2 + $0x370] sm:$0xff]  ;;  %v2233_v16 = vld [vmem:[#allocation2 + $0x378] sm:$0xff] }
 0x72b   : > { %3065 = vmatpush1.bf16.msra.mxu1 %v5020_v38  ;;  %3106 = vmatpush1.bf16.msra.mxu0 %v5022_v39  ;;  %v5040_v38 = vcombine.low %v2190_v58, %v2198_v23  ;;  %v5042_v39 = vcombine.low %v2191_v24, %v2199_v25  ;;  %v2208_v58 = vld [vmem:[#allocation2 + $0x2b0] sm:$0xff]  ;;  %v2209_v24 = vld [vmem:[#allocation2 + $0x2b8] sm:$0xff] }
 0x72c   : > { %3066 = vmatprep.subr.bf16.mxu1 %v5005_v40  ;;  %3107 = vmatprep.subr.bf16.mxu0 %v5007_v42  ;;  %v5025_v40 = vcombine.high %v2174_v34, %v2182_v35  ;;  %v5027_v42 = vcombine.high %v2175_v36, %v2183_v37  ;;  %v2216_v23 = vld [vmem:[#allocation2 + $0x2f0] sm:$0xff]  ;;  %v2217_v25 = vld [vmem:[#allocation2 + $0x2f8] sm:$0xff] }
 0x72f   : > { %3067 = vmatpush1.bf16.msra.mxu1 %v5004_v47  ;;  %3108 = vmatpush1.bf16.msra.mxu0 %v5006_v48  ;;  %v5024_v47 = vcombine.low %v2174_v34, %v2182_v35  ;;  %v5026_v48 = vcombine.low %v2175_v36, %v2183_v37  ;;  %v2192_v34 = vld [vmem:[#allocation2 + $0x230] sm:$0xff]  ;;  %v2193_v36 = vld [vmem:[#allocation2 + $0x238] sm:$0xff] }
 0x730   : > { %3068 = vmatprep.subr.bf16.mxu1 %v4989_v19  ;;  %3109 = vmatprep.subr.bf16.mxu0 %v4991_v49  ;;  %v5009_v19 = vcombine.high %v2158_v43, %v2166_v44  ;;  %v5011_v49 = vcombine.high %v2159_v45, %v2167_v46  ;;  %v2200_v35 = vld [vmem:[#allocation2 + $0x270] sm:$0xff]  ;;  %v2201_v37 = vld [vmem:[#allocation2 + $0x278] sm:$0xff] }
 0x733   : > { %3069 = vmatpush1.bf16.msra.mxu1 %v4988_v57  ;;  %3110 = vmatpush1.bf16.msra.mxu0 %v4990_v59  ;;  %v5008_v57 = vcombine.low %v2158_v43, %v2166_v44  ;;  %v5010_v59 = vcombine.low %v2159_v45, %v2167_v46  ;;  %v2176_v43 = vld [vmem:[#allocation2 + $0x1b0] sm:$0xff]  ;;  %v2177_v45 = vld [vmem:[#allocation2 + $0x1b8] sm:$0xff] }
 0x734   : > { %3070 = vmatprep.subr.bf16.mxu1 %v4973_v60  ;;  %3111 = vmatprep.subr.bf16.mxu0 %v4975_v61  ;;  %v4993_v60 = vcombine.high %v2142_v50, %v2150_v54  ;;  %v4995_v61 = vcombine.high %v2143_v55, %v2151_v56  ;;  %v2184_v44 = vld [vmem:[#allocation2 + $0x1f0] sm:$0xff]  ;;  %v2185_v46 = vld [vmem:[#allocation2 + $0x1f8] sm:$0xff] }
 0x737   : > { %3071 = vmatpush1.bf16.msra.mxu1 %v4972_v51  ;;  %3112 = vmatpush1.bf16.msra.mxu0 %v4974_v53  ;;  %v4992_v51 = vcombine.low %v2142_v50, %v2150_v54  ;;  %v4994_v53 = vcombine.low %v2143_v55, %v2151_v56  ;;  %v2168_v50 = vld [vmem:[#allocation2 + $0x170] sm:$0xff]  ;;  %v2161_v54 = vld [vmem:[#allocation2 + $0x138] sm:$0xff]  ;;  %v5028_v56 = vcombine.low %v2176_v43, %v2184_v44 }
 0x738   : > { %3138 = vmatprep.subr.bf16.mxu1 %v5089_v7  ;;  %3179 = vmatprep.subr.bf16.mxu0 %v5091_v8  ;;  %v4977_v7 = vcombine.high %v2126_v1, %v2134_v2  ;;  %v4979_v8 = vcombine.high %v2127_v3, %v2135_v4  ;;  %v2169_v55 = vld [vmem:[#allocation2 + $0x178] sm:$0xff] }
 0x73a   : > { %3089 = vmatmul.mubr.bf16.vlgmr.msra.gmra.mxu1 %v6346_v6  ;;  %3130 = vmatmul.mubr.bf16.vlgmr.msra.gmra.mxu0 %v6346_v6 }
 0x73b   : > { %3139 = vmatpush1.bf16.msra.mxu1 %v5088_v12  ;;  %3180 = vmatpush1.bf16.msra.mxu0 %v5090_v13  ;;  %v4976_v12 = vcombine.low %v2126_v1, %v2134_v2  ;;  %v4978_v13 = vcombine.low %v2127_v3, %v2135_v4  ;;  %v2152_v1 = vld [vmem:[#allocation2 + $0xf0] sm:$0xff]  ;;  %v2145_v2 = vld [vmem:[#allocation2 + $0xb8] sm:$0xff] }
 0x73c   : > { %3140 = vmatprep.subr.bf16.mxu1 %v5073_v62  ;;  %3181 = vmatprep.subr.bf16.mxu0 %v5075_v63  ;;  %v5093_v62 = vcombine.high %v2240_v9, %v2248_v10  ;;  %v5095_v63 = vcombine.high %v2241_v31, %v2249_v11  ;;  %v2153_v3 = vld [vmem:[#allocation2 + $0xf8] sm:$0xff] }
 0x73d   : > { %3170 = vmatprep.mubr.bf16.mxu1 %v5870_v0  ;;  %3211 = vmatprep.mubr.bf16.mxu0 %v5870_v0 }
 0x73f   : > { %3141 = vmatpush1.bf16.msra.mxu1 %v5072_v17  ;;  %3182 = vmatpush1.bf16.msra.mxu0 %v5074_v18  ;;  %v5092_v17 = vcombine.low %v2240_v9, %v2248_v10  ;;  %v5094_v18 = vcombine.low %v2241_v31, %v2249_v11  ;;  %v2136_v9 = vld [vmem:[#allocation2 + $0x70] sm:$0xff]  ;;  %v2129_v10 = vld [vmem:[#allocation2 + $0x38] sm:$0xff] }
 0x740   : > { %3142 = vmatprep.subr.bf16.mxu1 %v5057_v20  ;;  %3183 = vmatprep.subr.bf16.mxu0 %v5059_v21  ;;  %v5077_v20 = vcombine.high %v2224_v14, %v2232_v52  ;;  %v5079_v21 = vcombine.high %v2225_v15, %v2233_v16  ;;  %v2137_v31 = vld [vmem:[#allocation2 + $0x78] sm:$0xff] }
 0x743   : > { %3143 = vmatpush1.bf16.msra.mxu1 %v5056_v26  ;;  %3184 = vmatpush1.bf16.msra.mxu0 %v5058_v27  ;;  %v5076_v26 = vcombine.low %v2224_v14, %v2232_v52  ;;  %v5078_v27 = vcombine.low %v2225_v15, %v2233_v16  ;;  %v4982_v14 = vcombine.low %v2129_v10, %v2137_v31  ;;  %v5641_v52 = vld [vmem:[#allocation4 + $0x78] sm:$0xff]  }
 0x744   : > { %3144 = vmatprep.subr.bf16.mxu1 %v5041_v29  ;;  %3185 = vmatprep.subr.bf16.mxu0 %v5043_v33  ;;  %v5061_v29 = vcombine.high %v2208_v58, %v2216_v23  ;;  %v5063_v33 = vcombine.high %v2209_v24, %v2217_v25  ;;  %v5642_v15 = vld [vmem:[#allocation4 + $0xf8] sm:$0xff]  }
 0x745   : > { %v5643_v16 = vld [vmem:[#allocation4 + $0x38] sm:$0xff]  }
 0x747   : > { %3145 = vmatpush1.bf16.msra.mxu1 %v5040_v38  ;;  %3186 = vmatpush1.bf16.msra.mxu0 %v5042_v39  ;;  %v5060_v38 = vcombine.low %v2208_v58, %v2216_v23  ;;  %v5062_v39 = vcombine.low %v2209_v24, %v2217_v25  ;;  %v5648_v58 = vld [vmem:[#allocation4 + $0xb0] sm:$0xff]   ;;  %v5649_v23 = vld [vmem:[#allocation4 + $0x68] sm:$0xff]  }
 0x748   : > { %3146 = vmatprep.subr.bf16.mxu1 %v5025_v40  ;;  %3187 = vmatprep.subr.bf16.mxu0 %v5027_v42  ;;  %v5045_v40 = vcombine.high %v2192_v34, %v2200_v35  ;;  %v5047_v42 = vcombine.high %v2193_v36, %v2201_v37  ;;  %v5650_v24 = vld [vmem:[#allocation4 + $0xe8] sm:$0xff]  }
 0x749   : > { %v5651_v25 = vld [vmem:[#allocation4 + $0x28] sm:$0xff]  }
 0x74b   : > { %3147 = vmatpush1.bf16.msra.mxu1 %v5024_v47  ;;  %3188 = vmatpush1.bf16.msra.mxu0 %v5026_v48  ;;  %v5044_v47 = vcombine.low %v2192_v34, %v2200_v35  ;;  %v5046_v48 = vcombine.low %v2193_v36, %v2201_v37  ;;  %v5657_v34 = vld [vmem:[#allocation4 + $0x58] sm:$0xff]  }
 0x74c   : > { %3148 = vmatprep.subr.bf16.mxu1 %v5009_v19  ;;  %3189 = vmatprep.subr.bf16.mxu0 %v5011_v49  ;;  %v5029_v19 = vcombine.high %v2176_v43, %v2184_v44  ;;  %v2160_v49 = vld [vmem:[#allocation2 + $0x130] sm:$0xff]  ;;  %v5658_v35 = vld [vmem:[#allocation4 + $0xd8] sm:$0xff]   ;;  %v5665_v43 = vld [vmem:[#allocation4 + $0x48] sm:$0xff]  }
 0x74d   : > { %v5012_v4 = vcombine.low %v2160_v49, %v2168_v50  ;;  %v5659_v36 = vld [vmem:[#allocation4 + $0x18] sm:$0xff]   ;;  %v5666_v44 = vld [vmem:[#allocation4 + $0xc8] sm:$0xff]  }
 0x74e   : > { %v5660_v37 = vld [vmem:[#allocation4 + $0x98] sm:$0xff]  }
 0x74f   : > { %3149 = vmatpush1.bf16.msra.mxu1 %v5008_v57  ;;  %3190 = vmatpush1.bf16.msra.mxu0 %v5010_v59  ;;  %v5030_v57 = vcombine.low %v2177_v45, %v2185_v46  ;;  %v5013_v59 = vcombine.high %v2160_v49, %v2168_v50  ;;  %v5673_v49 = vld [vmem:[#allocation4 + $0x178] sm:$0xff]  }
 0x750   : > { %3150 = vmatprep.subr.bf16.mxu1 %v4993_v60  ;;  %3191 = vmatprep.subr.bf16.mxu0 %v4995_v61  ;;  %v5015_v60 = vcombine.high %v2161_v54, %v2169_v55  ;;  %v2144_v61 = vld [vmem:[#allocation2 + $0xb0] sm:$0xff]  ;;  %v5674_v50 = vld [vmem:[#allocation4 + $0x1f8] sm:$0xff]  }
 0x751   : > { %v4996_v11 = vcombine.low %v2144_v61, %v2152_v1 }
 0x753   : > { %3151 = vmatpush1.bf16.msra.mxu1 %v4992_v51  ;;  %3192 = vmatpush1.bf16.msra.mxu0 %v4994_v53  ;;  %v5014_v51 = vcombine.low %v2161_v54, %v2169_v55  ;;  %v4997_v53 = vcombine.high %v2144_v61, %v2152_v1  ;;  %v6365_v54 = vld [vmem:[%s6484_s10] sm:$0xff]  ;;  %v2268_v55 = vsub.s32 3, %v6106_v28 }
 0x754   : > { %3152 = vmatprep.subr.bf16.mxu1 %v4977_v7  ;;  %3193 = vmatprep.subr.bf16.mxu0 %v4979_v8  ;;  %v4999_v7 = vcombine.high %v2145_v2, %v2153_v3  ;;  %v2128_v8 = vld [vmem:[#allocation2 + $0x30] sm:$0xff] }
 0x757   : > { %3153 = vmatpush1.bf16.msra.mxu1 %v4976_v12  ;;  %3194 = vmatpush1.bf16.msra.mxu0 %v4978_v13  ;;  %v4998_v12 = vcombine.low %v2145_v2, %v2153_v3  ;;  %v4981_v13 = vcombine.high %v2128_v8, %v2136_v9 }
 0x758   : > { %3220 = vmatprep.subr.bf16.mxu1 %v5093_v62  ;;  %3261 = vmatprep.subr.bf16.mxu0 %v5095_v63  ;;  %v4983_v62 = vcombine.high %v2129_v10, %v2137_v31  ;;  %v4980_v63 = vcombine.low %v2128_v8, %v2136_v9 }
 0x75a   : > { %3171 = vmatmul.mubr.bf16.vlgmr.msra.gmra.mxu1 %v6346_v6  ;;  %3212 = vmatmul.mubr.bf16.vlgmr.msra.gmra.mxu0 %v6346_v6 }
 0x75b   : > { %3221 = vmatpush1.bf16.msra.mxu1 %v5092_v17  ;;  %3262 = vmatpush1.bf16.msra.mxu0 %v5094_v18  ;;  %v5644_v17 = vld [vmem:[#allocation4 + $0xb8] sm:$0xff]   ;;  %v5645_v18 = vld [vmem:[#allocation4 + $0x70] sm:$0xff]  }
 0x75c   : > { %3222 = vmatprep.subr.bf16.mxu1 %v5077_v20  ;;  %3263 = vmatprep.subr.bf16.mxu0 %v5079_v21  ;;  %v5646_v20 = vld [vmem:[#allocation4 + $0xf0] sm:$0xff]  }
 0x75d   : > { %3252 = vmatprep.mubr.bf16.mxu1 %v5870_v0  ;;  %3293 = vmatprep.mubr.bf16.mxu0 %v5870_v0  ;;  %v5031_v0 = vcombine.high %v2177_v45, %v2185_v46  ;;  %v5647_v21 = vld [vmem:[#allocation4 + $0x30] sm:$0xff]   ;;  %v5667_v45 = vld [vmem:[#allocation4 + $0x8] sm:$0xff]  }
 0x75e   : > { %v5668_v46 = vld [vmem:[#allocation4 + $0x88] sm:$0xff]  }
 0x75f   : > { %3223 = vmatpush1.bf16.msra.mxu1 %v5076_v26  ;;  %3264 = vmatpush1.bf16.msra.mxu0 %v5078_v27  ;;  %v5652_v26 = vld [vmem:[#allocation4 + $0xa8] sm:$0xff]   ;;  %v5653_v27 = vld [vmem:[#allocation4 + $0x60] sm:$0xff]  }
 0x760   : > { %3224 = vmatprep.subr.bf16.mxu1 %v5061_v29  ;;  %3265 = vmatprep.subr.bf16.mxu0 %v5063_v33  ;;  %v5654_v29 = vld [vmem:[#allocation4 + $0xe0] sm:$0xff]  }
 0x761   : > { %v5655_v33 = vld [vmem:[#allocation4 + $0x20] sm:$0xff]  }
 0x763   : > { %3225 = vmatpush1.bf16.msra.mxu1 %v5060_v38  ;;  %3266 = vmatpush1.bf16.msra.mxu0 %v5062_v39  ;;  %v5661_v38 = vld [vmem:[#allocation4 + $0x50] sm:$0xff]  }
 0x764   : > { %3226 = vmatprep.subr.bf16.mxu1 %v5045_v40  ;;  %3267 = vmatprep.subr.bf16.mxu0 %v5047_v42  ;;  %v5662_v39 = vld [vmem:[#allocation4 + $0xd0] sm:$0xff]  }
 0x765   : > { %v5663_v40 = vld [vmem:[#allocation4 + $0x10] sm:$0xff]  }
 0x766   : > { %v5664_v42 = vld [vmem:[#allocation4 + $0x90] sm:$0xff]  }
 0x767   : > { %3227 = vmatpush1.bf16.msra.mxu1 %v5044_v47  ;;  %3268 = vmatpush1.bf16.msra.mxu0 %v5046_v48  ;;  %v5669_v47 = vld [vmem:[#allocation4 + $0x40] sm:$0xff]  }
 0x768   : > { %3228 = vmatprep.subr.bf16.mxu1 %v5029_v19  ;;  %3269 = vmatprep.subr.bf16.mxu0 %v5031_v0  ;;  %v5670_v48 = vld [vmem:[#allocation4 + $0xc0] sm:$0xff]  }
 0x769   : > { %v5671_v19 = vld [vmem:[#allocation4] sm:$0xff]  }
 0x76a   : > { %v5672_v0 = vld [vmem:[#allocation4 + $0x80] sm:$0xff]  }
 0x76b   : > { %3229 = vmatpush1.bf16.msra.mxu1 %v5028_v56  ;;  %3270 = vmatpush1.bf16.msra.mxu0 %v5030_v57  ;;  %v2257_v56 = vrot.slane %v6365_v54, %v6113_v30  ;;  %v2265_v57 = vrot.slane %v6365_v54, %v6213_v41 }
 0x76c   : > { %3230 = vmatprep.subr.bf16.mxu1 %v5013_v59  ;;  %3271 = vmatprep.subr.bf16.mxu0 %v5015_v60  ;;  %v2261_v59 = vrot.slane %v6365_v54, %v6122_v32  ;;  %v2269_v60 = vrot.slane %v6365_v54, %v2268_v55 }
 0x76f   : > { %3231 = vmatpush1.bf16.msra.mxu1 %v5012_v4  ;;  %3272 = vmatpush1.bf16.msra.mxu0 %v5014_v51 }
 0x770   : > { %3232 = vmatprep.subr.bf16.mxu1 %v4997_v53  ;;  %3273 = vmatprep.subr.bf16.mxu0 %v4999_v7 }
 0x773   : > { %3233 = vmatpush1.bf16.msra.mxu1 %v4996_v11  ;;  %3274 = vmatpush1.bf16.msra.mxu0 %v4998_v12 }
 0x774   : > { %3234 = vmatprep.subr.bf16.mxu1 %v4981_v13  ;;  %3275 = vmatprep.subr.bf16.mxu0 %v4983_v62 }
 0x777   : > { %3235 = vmatpush1.bf16.msra.mxu1 %v4980_v63  ;;  %3276 = vmatpush1.bf16.msra.mxu0 %v4982_v14 }
 0x778   : > { %5272 = vmatprep.subr.bf16.mxu1 %v5641_v52  ;;  %5294 = vmatprep.subr.bf16.mxu0 %v5642_v15  ;;  %v5675_v52 = vld [vmem:[#allocation4 + $0x138] sm:$0xff]  }
 0x779   : > { %v5676_v15 = vld [vmem:[#allocation4 + $0x1b8] sm:$0xff]  }
 0x77a   : > { %3253 = vmatmul.mubr.bf16.vlgmr.msra.gmra.mxu1 %v6346_v6  ;;  %3294 = vmatmul.mubr.bf16.vlgmr.msra.gmra.mxu0 %v6346_v6  ;;  %v5656_v6 = vld [vmem:[#allocation4 + $0xa0] sm:$0xff]  }
 0x77b   : > { %5273 = vmatpush3.bf16.msra.mxu1 %v5643_v16  ;;  %5295 = vmatpush3.bf16.msra.mxu0 %v5644_v17 }
 0x77c   : > { %5274 = vmatprep.subr.bf16.mxu1 %v5645_v18  ;;  %5296 = vmatprep.subr.bf16.mxu0 %v5646_v20  ;;  %v5677_v18 = vld [vmem:[#allocation4 + $0x170] sm:$0xff]  }
 0x77d   : > { %v5678_v20 = vld [vmem:[#allocation4 + $0x1f0] sm:$0xff]  }
 0x77f   : > { %5275 = vmatpush3.bf16.msra.mxu1 %v5647_v21  ;;  %5297 = vmatpush3.bf16.msra.mxu0 %v5648_v58  ;;  %v5679_v21 = vld [vmem:[#allocation4 + $0x130] sm:$0xff]  }
 0x780   : > { %5276 = vmatprep.subr.bf16.mxu1 %v5649_v23  ;;  %5298 = vmatprep.subr.bf16.mxu0 %v5650_v24  ;;  %v5680_v58 = vld [vmem:[#allocation4 + $0x1b0] sm:$0xff]   ;;  %v5681_v23 = vld [vmem:[#allocation4 + $0x168] sm:$0xff]  }
 0x781   : > { %v5682_v24 = vld [vmem:[#allocation4 + $0x1e8] sm:$0xff]  }
 0x783   : > { %5277 = vmatpush3.bf16.msra.mxu1 %v5651_v25  ;;  %5299 = vmatpush3.bf16.msra.mxu0 %v5652_v26  ;;  %v5683_v25 = vld [vmem:[#allocation4 + $0x128] sm:$0xff]  }
 0x784   : > { %5278 = vmatprep.subr.bf16.mxu1 %v5653_v27  ;;  %5300 = vmatprep.subr.bf16.mxu0 %v5654_v29  ;;  %v5684_v26 = vld [vmem:[#allocation4 + $0x1a8] sm:$0xff]   ;;  %v5685_v27 = vld [vmem:[#allocation4 + $0x160] sm:$0xff]  }
 0x785   : > { %v5686_v29 = vld [vmem:[#allocation4 + $0x1e0] sm:$0xff]  }
 0x787   : > { %5279 = vmatpush3.bf16.msra.mxu1 %v5655_v33  ;;  %5301 = vmatpush3.bf16.msra.mxu0 %v5656_v6  ;;  %v5687_v33 = vld [vmem:[#allocation4 + $0x120] sm:$0xff]  }
 0x788   : > { %5280 = vmatprep.subr.bf16.mxu1 %v5657_v34  ;;  %5302 = vmatprep.subr.bf16.mxu0 %v5658_v35  ;;  %v5688_v6 = vld [vmem:[#allocation4 + $0x1a0] sm:$0xff]   ;;  %v5689_v34 = vld [vmem:[#allocation4 + $0x158] sm:$0xff]  }
 0x789   : > { %v5690_v35 = vld [vmem:[#allocation4 + $0x1d8] sm:$0xff]  }
 0x78b   : > { %5281 = vmatpush3.bf16.msra.mxu1 %v5659_v36  ;;  %5303 = vmatpush3.bf16.msra.mxu0 %v5660_v37  ;;  %v5691_v36 = vld [vmem:[#allocation4 + $0x118] sm:$0xff]  }
 0x78c   : > { %5282 = vmatprep.subr.bf16.mxu1 %v5661_v38  ;;  %5304 = vmatprep.subr.bf16.mxu0 %v5662_v39  ;;  %v5692_v37 = vld [vmem:[#allocation4 + $0x198] sm:$0xff]   ;;  %v5693_v38 = vld [vmem:[#allocation4 + $0x150] sm:$0xff]  }
 0x78d   : > { %v5694_v39 = vld [vmem:[#allocation4 + $0x1d0] sm:$0xff]  }
 0x78f   : > { %5283 = vmatpush3.bf16.msra.mxu1 %v5663_v40  ;;  %5305 = vmatpush3.bf16.msra.mxu0 %v5664_v42  ;;  %v2272_v40 = vsub.s32 4, %v6106_v28  ;;  %v2280_v42 = vsub.s32 6, %v6106_v28 }
 0x790   : > { %5284 = vmatprep.subr.bf16.mxu1 %v5665_v43  ;;  %5306 = vmatprep.subr.bf16.mxu0 %v5666_v44  ;;  %v5695_v43 = vld [vmem:[#allocation4 + $0x110] sm:$0xff]  }
 0x791   : > { %v5696_v44 = vld [vmem:[#allocation4 + $0x190] sm:$0xff]  }
 0x793   : > { %5285 = vmatpush3.bf16.msra.mxu1 %v5667_v45  ;;  %5307 = vmatpush3.bf16.msra.mxu0 %v5668_v46  ;;  %v2276_v45 = vsub.s32 5, %v6106_v28  ;;  %v2284_v46 = vsub.s32 7, %v6106_v28  ;;  %v5768_v28 = vld [vmem:[#allocation4 + $0x380] sm:$0xff]  }
 0x794   : > { %5286 = vmatprep.subr.bf16.mxu1 %v5669_v47  ;;  %5308 = vmatprep.subr.bf16.mxu0 %v5670_v48  ;;  %v5697_v47 = vld [vmem:[#allocation4 + $0x148] sm:$0xff]  }
 0x795   : > { %v5698_v48 = vld [vmem:[#allocation4 + $0x1c8] sm:$0xff]  }
 0x797   : > { %5287 = vmatpush3.bf16.msra.mxu1 %v5671_v19  ;;  %5309 = vmatpush3.bf16.msra.mxu0 %v5672_v0  ;;  %v2273_v19 = vrot.slane %v6365_v54, %v2272_v40  ;;  %v2281_v0 = vrot.slane %v6365_v54, %v2280_v42 }
 0x798   : > { %5316 = vmatprep.subr.bf16.mxu1 %v5673_v49  ;;  %5338 = vmatprep.subr.bf16.mxu0 %v5674_v50  ;;  %v2277_v49 = vrot.slane %v6365_v54, %v2276_v45  ;;  %v2285_v50 = vrot.slane %v6365_v54, %v2284_v46 }
 0x7da   : > { %v3008_v61 = vpop.f32.mrf.mxu1  ;;  %v3049_v1 = vpop.f32.mrf.mxu0 }
 0x7db   : > { %v3009_v2 = vadd.f32 %v3008_v61, %v2257_v56  ;;  %v3050_v3 = vadd.f32 %v3049_v1, %v2265_v57  ;;  %v5699_v56 = vld [vmem:[#allocation4 + $0x108] sm:$0xff]   ;;  %v5701_v61 = vld [vmem:[#allocation4 + $0x140] sm:$0xff]  }
 0x7dc   : > { %v3010_v4 = vpop.f32.mrf.mxu1  ;;  %v3051_v51 = vpop.f32.mrf.mxu0  ;;  %v5700_v57 = vld [vmem:[#allocation4 + $0x188] sm:$0xff]   ;;  %v5702_v1 = vld [vmem:[#allocation4 + $0x1c0] sm:$0xff]  }
 0x7dd   : > { %v3011_v53 = vadd.f32 %v3010_v4, %v2261_v59  ;;  %v3052_v7 = vadd.f32 %v3051_v51, %v2269_v60  ;;  %v3302_v8 = vmax.f32 %v3009_v2, 0.0  ;;  %v3304_v9 = vmax.f32 %v3050_v3, 0.0 }
 0x7de   : > { %v3012_v10 = vpop.f32.mrf.mxu1  ;;  %v3053_v31 = vpop.f32.mrf.mxu0 }
 0x7df   : > { %v3303_v11 = vmax.f32 %v3011_v53, 0.0  ;;  %v3305_v12 = vmax.f32 %v3052_v7, 0.0  ;;  %v3318_v16 = vpack.c.bf16 %v3302_v8, %v3302_v8  ;;  %v3320_v17 = vpack.c.bf16 %v3304_v9, %v3304_v9  ;;  %v5703_v8 = vld [vmem:[#allocation4 + $0x100] sm:$0xff]  }
 0x7e0   : > { %v3013_v13 = vpop.f32.mrf.mxu1  ;;  %v3054_v62 = vpop.f32.mrf.mxu0  ;;  %v5704_v9 = vld [vmem:[#allocation4 + $0x180] sm:$0xff]  }
 0x7e1   : > { %v3319_v63 = vpack.c.bf16 %v3303_v11, %v3303_v11  ;;  %v3321_v14 = vpack.c.bf16 %v3305_v12, %v3305_v12  ;;  %v5705_v12 = vld [vmem:[#allocation4 + $0x278] sm:$0xff]  }
 0x7e2   : > { %v5706_v13 = vld [vmem:[#allocation4 + $0x2f8] sm:$0xff]  }
 0x7e3   : > { %4397 = vmatprep.mubr.bf16.mxu1 %v3319_v63  ;;  %4437 = vmatprep.mubr.bf16.mxu0 %v3321_v14 }
 0x7e4   : > { %4398 = vmatmul.mubr.bf16.vlgmr.msra.gmra.mxu1 %v3318_v16  ;;  %4438 = vmatmul.mubr.bf16.vlgmr.msra.gmra.mxu0 %v3320_v17  ;;  %v5707_v17 = vld [vmem:[#allocation4 + $0x238] sm:$0xff]  }
 0x7e5   : > { %5317 = vmatpush3.bf16.msra.mxu1 %v5675_v52  ;;  %5339 = vmatpush3.bf16.msra.mxu0 %v5676_v15 }
 0x7e6   : > { %5318 = vmatprep.subr.bf16.mxu1 %v5677_v18  ;;  %5340 = vmatprep.subr.bf16.mxu0 %v5678_v20  ;;  %v5708_v18 = vld [vmem:[#allocation4 + $0x2b8] sm:$0xff]  }
 0x7e9   : > { %5319 = vmatpush3.bf16.msra.mxu1 %v5679_v21  ;;  %5341 = vmatpush3.bf16.msra.mxu0 %v5680_v58  ;;  %v5709_v58 = vld [vmem:[#allocation4 + $0x270] sm:$0xff]  }
 0x7ea   : > { %5320 = vmatprep.subr.bf16.mxu1 %v5681_v23  ;;  %5342 = vmatprep.subr.bf16.mxu0 %v5682_v24  ;;  %v5710_v23 = vld [vmem:[#allocation4 + $0x2f0] sm:$0xff]  }
 0x7eb   : > { %v5711_v24 = vld [vmem:[#allocation4 + $0x230] sm:$0xff]  }
 0x7ed   : > { %5321 = vmatpush3.bf16.msra.mxu1 %v5683_v25  ;;  %5343 = vmatpush3.bf16.msra.mxu0 %v5684_v26  ;;  %v5712_v25 = vld [vmem:[#allocation4 + $0x2b0] sm:$0xff]   ;;  %v5713_v26 = vld [vmem:[#allocation4 + $0x268] sm:$0xff]  }
 0x7ee   : > { %5322 = vmatprep.subr.bf16.mxu1 %v5685_v27  ;;  %5344 = vmatprep.subr.bf16.mxu0 %v5686_v29  ;;  %v5714_v27 = vld [vmem:[#allocation4 + $0x2e8] sm:$0xff]  }
 0x7ef   : > { %v5715_v29 = vld [vmem:[#allocation4 + $0x228] sm:$0xff]  }
 0x7f1   : > { %5323 = vmatpush3.bf16.msra.mxu1 %v5687_v33  ;;  %5345 = vmatpush3.bf16.msra.mxu0 %v5688_v6  ;;  %v5716_v33 = vld [vmem:[#allocation4 + $0x2a8] sm:$0xff]   ;;  %v5717_v6 = vld [vmem:[#allocation4 + $0x260] sm:$0xff]  }
 0x7f2   : > { %5324 = vmatprep.subr.bf16.mxu1 %v5689_v34  ;;  %5346 = vmatprep.subr.bf16.mxu0 %v5690_v35  ;;  %v5718_v34 = vld [vmem:[#allocation4 + $0x2e0] sm:$0xff]  }
 0x7f3   : > { %v5719_v35 = vld [vmem:[#allocation4 + $0x220] sm:$0xff]  }
 0x7f5   : > { %5325 = vmatpush3.bf16.msra.mxu1 %v5691_v36  ;;  %5347 = vmatpush3.bf16.msra.mxu0 %v5692_v37  ;;  %v5720_v36 = vld [vmem:[#allocation4 + $0x2a0] sm:$0xff]   ;;  %v5721_v37 = vld [vmem:[#allocation4 + $0x258] sm:$0xff]  }
 0x7f6   : > { %5326 = vmatprep.subr.bf16.mxu1 %v5693_v38  ;;  %5348 = vmatprep.subr.bf16.mxu0 %v5694_v39  ;;  %v5722_v38 = vld [vmem:[#allocation4 + $0x2d8] sm:$0xff]  }
 0x7f7   : > { %v5723_v39 = vld [vmem:[#allocation4 + $0x218] sm:$0xff]  }
 0x7f9   : > { %5327 = vmatpush3.bf16.msra.mxu1 %v5695_v43  ;;  %5349 = vmatpush3.bf16.msra.mxu0 %v5696_v44  ;;  %v5724_v43 = vld [vmem:[#allocation4 + $0x298] sm:$0xff]   ;;  %v5725_v44 = vld [vmem:[#allocation4 + $0x250] sm:$0xff]  }
 0x7fa   : > { %v3090_v59 = vpop.f32.mrf.mxu1  ;;  %v3131_v60 = vpop.f32.mrf.mxu0  ;;  %5328 = vmatprep.subr.bf16.mxu1 %v5697_v47  ;;  %5350 = vmatprep.subr.bf16.mxu0 %v5698_v48  ;;  %v5726_v47 = vld [vmem:[#allocation4 + $0x2d0] sm:$0xff]   ;;  %v6396_v48 = vld [vmem:[%s6484_s10 + $0x8] sm:$0xff] }
 0x7fb   : > { %v3091_v2 = vadd.f32 %v3090_v59, %v2273_v19  ;;  %v3132_v3 = vadd.f32 %v3131_v60, %v2281_v0  ;;  %v5727_v19 = vld [vmem:[#allocation4 + $0x210] sm:$0xff]   ;;  %v2293_v59 = vrot.slane %v6396_v48, %v6122_v32  ;;  %v2301_v60 = vrot.slane %v6396_v48, %v2268_v55  ;;  %v5735_v32 = vld [vmem:[#allocation4 + $0x200] sm:$0xff]  }
 0x7fc   : > { %v3092_v4 = vpop.f32.mrf.mxu1  ;;  %v3133_v51 = vpop.f32.mrf.mxu0  ;;  %v5728_v0 = vld [vmem:[#allocation4 + $0x290] sm:$0xff]  }
 0x7fd   : > { %v3093_v53 = vadd.f32 %v3092_v4, %v2277_v49  ;;  %v3134_v7 = vadd.f32 %v3133_v51, %v2285_v50  ;;  %5329 = vmatpush3.bf16.msra.mxu1 %v5699_v56  ;;  %5351 = vmatpush3.bf16.msra.mxu0 %v5700_v57  ;;  %v3306_v10 = vmax.f32 %v3091_v2, 0.0  ;;  %v3308_v54 = vmax.f32 %v3132_v3, 0.0  ;;  %v5729_v49 = vld [vmem:[#allocation4 + $0x248] sm:$0xff]   ;;  %v5733_v4 = vld [vmem:[#allocation4 + $0x240] sm:$0xff]  }
 0x7fe   : > { %v3094_v31 = vpop.f32.mrf.mxu1  ;;  %v3135_v11 = vpop.f32.mrf.mxu0  ;;  %5330 = vmatprep.subr.bf16.mxu1 %v5701_v61  ;;  %5352 = vmatprep.subr.bf16.mxu0 %v5702_v1  ;;  %v5730_v50 = vld [vmem:[#allocation4 + $0x2c8] sm:$0xff]   ;;  %v2289_v56 = vrot.slane %v6396_v48, %v6113_v30  ;;  %v2297_v57 = vrot.slane %v6396_v48, %v6213_v41  ;;  %v5734_v30 = vld [vmem:[#allocation4 + $0x2c0] sm:$0xff]  }
 0x7ff   : > { %v3307_v62 = vmax.f32 %v3093_v53, 0.0  ;;  %v3309_v63 = vmax.f32 %v3134_v7, 0.0  ;;  %v3322_v20 = vpack.c.bf16 %v3306_v10, %v3306_v10  ;;  %v3324_v21 = vpack.c.bf16 %v3308_v54, %v3308_v54  ;;  %v5731_v61 = vld [vmem:[#allocation4 + $0x208] sm:$0xff]   ;;  %v5736_v10 = vld [vmem:[#allocation4 + $0x280] sm:$0xff]  }
 0x800   : > { %v3095_v14 = vpop.f32.mrf.mxu1  ;;  %v3136_v52 = vpop.f32.mrf.mxu0  ;;  %v5732_v1 = vld [vmem:[#allocation4 + $0x288] sm:$0xff]  }
 0x801   : > { %v3323_v15 = vpack.c.bf16 %v3307_v62, %v3307_v62  ;;  %v3325_v16 = vpack.c.bf16 %v3309_v63, %v3309_v63  ;;  %5331 = vmatpush3.bf16.msra.mxu1 %v5703_v8  ;;  %5353 = vmatpush3.bf16.msra.mxu0 %v5704_v9 }
 0x802   : > { %5360 = vmatprep.subr.bf16.mxu1 %v5705_v12  ;;  %5382 = vmatprep.subr.bf16.mxu0 %v5706_v13  ;;  %v5737_v12 = vld [vmem:[#allocation4 + $0x378] sm:$0xff]  }
 0x803   : > { %4477 = vmatprep.mubr.bf16.mxu1 %v3323_v15  ;;  %4517 = vmatprep.mubr.bf16.mxu0 %v3325_v16  ;;  %v5738_v13 = vld [vmem:[#allocation4 + $0x3f8] sm:$0xff]  }
 0x804   : > { %4478 = vmatmul.mubr.bf16.vlgmr.msra.gmra.mxu1 %v3322_v20  ;;  %4518 = vmatmul.mubr.bf16.vlgmr.msra.gmra.mxu0 %v3324_v21 }
 0x805   : > { %5361 = vmatpush3.bf16.msra.mxu1 %v5707_v17  ;;  %5383 = vmatpush3.bf16.msra.mxu0 %v5708_v18  ;;  %v5739_v17 = vld [vmem:[#allocation4 + $0x338] sm:$0xff]  }
 0x806   : > { %5362 = vmatprep.subr.bf16.mxu1 %v5709_v58  ;;  %5384 = vmatprep.subr.bf16.mxu0 %v5710_v23  ;;  %v5740_v18 = vld [vmem:[#allocation4 + $0x3b8] sm:$0xff]   ;;  %v5741_v58 = vld [vmem:[#allocation4 + $0x370] sm:$0xff]  }
 0x807   : > { %v5742_v23 = vld [vmem:[#allocation4 + $0x3f0] sm:$0xff]  }
 0x809   : > { %5363 = vmatpush3.bf16.msra.mxu1 %v5711_v24  ;;  %5385 = vmatpush3.bf16.msra.mxu0 %v5712_v25  ;;  %v5743_v24 = vld [vmem:[#allocation4 + $0x330] sm:$0xff]  }
 0x80a   : > { %5364 = vmatprep.subr.bf16.mxu1 %v5713_v26  ;;  %5386 = vmatprep.subr.bf16.mxu0 %v5714_v27  ;;  %v5744_v25 = vld [vmem:[#allocation4 + $0x3b0] sm:$0xff]   ;;  %v5745_v26 = vld [vmem:[#allocation4 + $0x368] sm:$0xff]  }
 0x80b   : > { %v5746_v27 = vld [vmem:[#allocation4 + $0x3e8] sm:$0xff]  }
 0x80d   : > { %5365 = vmatpush3.bf16.msra.mxu1 %v5715_v29  ;;  %5387 = vmatpush3.bf16.msra.mxu0 %v5716_v33  ;;  %v5747_v29 = vld [vmem:[#allocation4 + $0x328] sm:$0xff]  }
 0x80e   : > { %5366 = vmatprep.subr.bf16.mxu1 %v5717_v6  ;;  %5388 = vmatprep.subr.bf16.mxu0 %v5718_v34  ;;  %v5748_v33 = vld [vmem:[#allocation4 + $0x3a8] sm:$0xff]   ;;  %v5749_v6 = vld [vmem:[#allocation4 + $0x360] sm:$0xff]  }
 0x80f   : > { %v5750_v34 = vld [vmem:[#allocation4 + $0x3e0] sm:$0xff]  }
 0x811   : > { %5367 = vmatpush3.bf16.msra.mxu1 %v5719_v35  ;;  %5389 = vmatpush3.bf16.msra.mxu0 %v5720_v36  ;;  %v5751_v35 = vld [vmem:[#allocation4 + $0x320] sm:$0xff]  }
 0x812   : > { %5368 = vmatprep.subr.bf16.mxu1 %v5721_v37  ;;  %5390 = vmatprep.subr.bf16.mxu0 %v5722_v38  ;;  %v5752_v36 = vld [vmem:[#allocation4 + $0x3a0] sm:$0xff]   ;;  %v5753_v37 = vld [vmem:[#allocation4 + $0x358] sm:$0xff]  }
 0x813   : > { %v5754_v38 = vld [vmem:[#allocation4 + $0x3d8] sm:$0xff]  }
 0x815   : > { %5369 = vmatpush3.bf16.msra.mxu1 %v5723_v39  ;;  %5391 = vmatpush3.bf16.msra.mxu0 %v5724_v43  ;;  %v5755_v39 = vld [vmem:[#allocation4 + $0x318] sm:$0xff]  }
 0x816   : > { %5370 = vmatprep.subr.bf16.mxu1 %v5725_v44  ;;  %5392 = vmatprep.subr.bf16.mxu0 %v5726_v47  ;;  %v5756_v43 = vld [vmem:[#allocation4 + $0x398] sm:$0xff]   ;;  %v5757_v44 = vld [vmem:[#allocation4 + $0x350] sm:$0xff]  }
 0x817   : > { %v5758_v47 = vld [vmem:[#allocation4 + $0x3d0] sm:$0xff]  }
 0x819   : > { %5371 = vmatpush3.bf16.msra.mxu1 %v5727_v19  ;;  %5393 = vmatpush3.bf16.msra.mxu0 %v5728_v0  ;;  %v5759_v19 = vld [vmem:[#allocation4 + $0x310] sm:$0xff]  }
 0x81a   : > { %v3172_v2 = vpop.f32.mrf.mxu1  ;;  %v3213_v3 = vpop.f32.mrf.mxu0  ;;  %5372 = vmatprep.subr.bf16.mxu1 %v5729_v49  ;;  %5394 = vmatprep.subr.bf16.mxu0 %v5730_v50  ;;  %v5760_v0 = vld [vmem:[#allocation4 + $0x390] sm:$0xff]   ;;  %v5761_v49 = vld [vmem:[#allocation4 + $0x348] sm:$0xff]  }
 0x81b   : > { %v3173_v51 = vadd.f32 %v3172_v2, %v2289_v56  ;;  %v3214_v53 = vadd.f32 %v3213_v3, %v2297_v57  ;;  %v5762_v50 = vld [vmem:[#allocation4 + $0x3c8] sm:$0xff]   ;;  %v2305_v56 = vrot.slane %v6396_v48, %v2272_v40  ;;  %v2313_v57 = vrot.slane %v6396_v48, %v2280_v42  ;;  %v5765_v40 = vld [vmem:[#allocation4 + $0x340] sm:$0xff]  }
 0x81c   : > { %v3174_v41 = vpop.f32.mrf.mxu1  ;;  %v3215_v7 = vpop.f32.mrf.mxu0 }
 0x81d   : > { %v3175_v8 = vadd.f32 %v3174_v41, %v2293_v59  ;;  %v3216_v9 = vadd.f32 %v3215_v7, %v2301_v60  ;;  %5373 = vmatpush3.bf16.msra.mxu1 %v5731_v61  ;;  %5395 = vmatpush3.bf16.msra.mxu0 %v5732_v1  ;;  %v3310_v54 = vmax.f32 %v3173_v51, 0.0  ;;  %v3312_v55 = vmax.f32 %v3214_v53, 0.0  ;;  %v5763_v61 = vld [vmem:[#allocation4 + $0x308] sm:$0xff]  }
 0x81e   : > { %v3176_v31 = vpop.f32.mrf.mxu1  ;;  %v3217_v11 = vpop.f32.mrf.mxu0  ;;  %5374 = vmatprep.subr.bf16.mxu1 %v5733_v4  ;;  %5396 = vmatprep.subr.bf16.mxu0 %v5734_v30  ;;  %v2309_v59 = vrot.slane %v6396_v48, %v2276_v45  ;;  %v2317_v60 = vrot.slane %v6396_v48, %v2284_v46  ;;  %v5764_v1 = vld [vmem:[#allocation4 + $0x388] sm:$0xff]   ;;  %v5766_v4 = vld [vmem:[#allocation4 + $0x3c0] sm:$0xff]  }
 0x81f   : > { %v3311_v62 = vmax.f32 %v3175_v8, 0.0  ;;  %v3313_v63 = vmax.f32 %v3216_v9, 0.0  ;;  %v3326_v20 = vpack.c.bf16 %v3310_v54, %v3310_v54  ;;  %v3328_v21 = vpack.c.bf16 %v3312_v55, %v3312_v55  ;;  %v5767_v45 = vld [vmem:[#allocation4 + $0x300] sm:$0xff]  }
 0x820   : > { %v3177_v14 = vpop.f32.mrf.mxu1  ;;  %v3218_v52 = vpop.f32.mrf.mxu0 }
 0x821   : > { %v3327_v15 = vpack.c.bf16 %v3311_v62, %v3311_v62  ;;  %v3329_v16 = vpack.c.bf16 %v3313_v63, %v3313_v63  ;;  %5375 = vmatpush3.bf16.msra.mxu1 %v5735_v32  ;;  %5397 = vmatpush3.bf16.msra.mxu0 %v5736_v10  ;;  %v5096_v14 = vld [vmem:[%s6486_s12] ss:$0 sm:$0xff] }
 0x822   : > { %5404 = vmatprep.subr.bf16.mxu1 %v5737_v12  ;;  %5426 = vmatprep.subr.bf16.mxu0 %v5738_v13 }
 0x823   : > { %4557 = vmatprep.mubr.bf16.mxu1 %v3327_v15  ;;  %4597 = vmatprep.mubr.bf16.mxu0 %v3329_v16 }
 0x824   : > { %4558 = vmatmul.mubr.bf16.vlgmr.msra.gmra.mxu1 %v3326_v20  ;;  %4598 = vmatmul.mubr.bf16.vlgmr.msra.gmra.mxu0 %v3328_v21 }
 0x825   : > { %5405 = vmatpush3.bf16.msra.mxu1 %v5739_v17  ;;  %5427 = vmatpush3.bf16.msra.mxu0 %v5740_v18 }
 0x826   : > { %5406 = vmatprep.subr.bf16.mxu1 %v5741_v58  ;;  %5428 = vmatprep.subr.bf16.mxu0 %v5742_v23 }
 0x829   : > { %5407 = vmatpush3.bf16.msra.mxu1 %v5743_v24  ;;  %5429 = vmatpush3.bf16.msra.mxu0 %v5744_v25 }
 0x82a   : > { %5408 = vmatprep.subr.bf16.mxu1 %v5745_v26  ;;  %5430 = vmatprep.subr.bf16.mxu0 %v5746_v27 }
 0x82d   : > { %5409 = vmatpush3.bf16.msra.mxu1 %v5747_v29  ;;  %5431 = vmatpush3.bf16.msra.mxu0 %v5748_v33 }
 0x82e   : > { %5410 = vmatprep.subr.bf16.mxu1 %v5749_v6  ;;  %5432 = vmatprep.subr.bf16.mxu0 %v5750_v34 }
 0x831   : > { %5411 = vmatpush3.bf16.msra.mxu1 %v5751_v35  ;;  %5433 = vmatpush3.bf16.msra.mxu0 %v5752_v36 }
 0x832   : > { %5412 = vmatprep.subr.bf16.mxu1 %v5753_v37  ;;  %5434 = vmatprep.subr.bf16.mxu0 %v5754_v38 }
 0x835   : > { %5413 = vmatpush3.bf16.msra.mxu1 %v5755_v39  ;;  %5435 = vmatpush3.bf16.msra.mxu0 %v5756_v43 }
 0x836   : > { %5414 = vmatprep.subr.bf16.mxu1 %v5757_v44  ;;  %5436 = vmatprep.subr.bf16.mxu0 %v5758_v47 }
 0x839   : > { %5415 = vmatpush3.bf16.msra.mxu1 %v5759_v19  ;;  %5437 = vmatpush3.bf16.msra.mxu0 %v5760_v0 }
 0x83a   : > { %v3254_v2 = vpop.f32.mrf.mxu1  ;;  %v3295_v3 = vpop.f32.mrf.mxu0  ;;  %5416 = vmatprep.subr.bf16.mxu1 %v5761_v49  ;;  %5438 = vmatprep.subr.bf16.mxu0 %v5762_v50 }
 0x83b   : > { %v3255_v30 = vadd.f32 %v3254_v2, %v2305_v56  ;;  %v3296_v42 = vadd.f32 %v3295_v3, %v2313_v57 }
 0x83c   : > { %v3256_v51 = vpop.f32.mrf.mxu1  ;;  %v3297_v53 = vpop.f32.mrf.mxu0 }
 0x83d   : > { %v3257_v41 = vadd.f32 %v3256_v51, %v2309_v59  ;;  %v3298_v7 = vadd.f32 %v3297_v53, %v2317_v60  ;;  %5417 = vmatpush3.bf16.msra.mxu1 %v5763_v61  ;;  %5439 = vmatpush3.bf16.msra.mxu0 %v5764_v1  ;;  %v3314_v8 = vmax.f32 %v3255_v30, 0.0  ;;  %v3316_v46 = vmax.f32 %v3296_v42, 0.0 }
 0x83e   : > { %v3258_v48 = vpop.f32.mrf.mxu1  ;;  %v3299_v9 = vpop.f32.mrf.mxu0  ;;  %5418 = vmatprep.subr.bf16.mxu1 %v5765_v40  ;;  %5440 = vmatprep.subr.bf16.mxu0 %v5766_v4 }
 0x83f   : > { %v3315_v32 = vmax.f32 %v3257_v41, 0.0  ;;  %v3317_v10 = vmax.f32 %v3298_v7, 0.0  ;;  %v3330_v12 = vpack.c.bf16 %v3314_v8, %v3314_v8  ;;  %v3332_v13 = vpack.c.bf16 %v3316_v46, %v3316_v46  ;;  %v5769_v8 = vld [vmem:[%s6489_s15 + $0x38] sm:$0xff]   ;;  %v5770_v46 = vld [vmem:[%s6489_s15 + $0x30] sm:$0xff]  }
 0x840   : > { %v3259_v54 = vpop.f32.mrf.mxu1  ;;  %v3300_v55 = vpop.f32.mrf.mxu0 }
 0x841   : > { %v3331_v31 = vpack.c.bf16 %v3315_v32, %v3315_v32  ;;  %v3333_v11 = vpack.c.bf16 %v3317_v10, %v3317_v10  ;;  %5419 = vmatpush3.bf16.msra.mxu1 %v5767_v45  ;;  %5441 = vmatpush3.bf16.msra.mxu0 %v5768_v28  ;;  %v5772_v54 = vld [vmem:[%s6489_s15 + $0x20] sm:$0xff]   ;;  %v5773_v55 = vld [vmem:[%s6489_s15 + $0x18] sm:$0xff]  }
 0x842   : > { %5541 = vmatprep.subr.bf16.mxu1 %v5871_v22 }
 0x843   : > { %4637 = vmatprep.mubr.bf16.mxu1 %v3331_v31  ;;  %4677 = vmatprep.mubr.bf16.mxu0 %v3333_v11  ;;  %v5774_v31 = vld [vmem:[%s6489_s15 + $0x10] sm:$0xff]   ;;  %v5775_v11 = vld [vmem:[%s6489_s15 + $0x8] sm:$0xff]  }
 0x844   : > { %4638 = vmatmul.mubr.bf16.vlgmr.msra.gmra.mxu1 %v3330_v12  ;;  %4678 = vmatmul.mubr.bf16.vlgmr.msra.gmra.mxu0 %v3332_v13  ;;  %v5776_v12 = vld [vmem:[%s6489_s15] sm:$0xff]  }
 0x845   : > { %5557 = vmatprep.mubr.msk.bf16.mxu1 %vm5873_vm0, %v5871_v22  ;;  %5542 = vmatpush3.bf16.msra.mxu1 %v5769_v8 }
 0x846   : > { %5543 = vmatprep.subr.bf16.mxu1 %v5871_v22 }
 0x849   : > { %5544 = vmatpush3.bf16.msra.mxu1 %v5770_v46 }
 0x84a   : > { %5545 = vmatprep.subr.bf16.mxu1 %v5871_v22 }
 0x8a4   : > { %v5288_v62 = vpop.f32.mrf.mxu1  ;;  %v5310_v63 = vpop.f32.mrf.mxu0 }
 0x8a6   : > { %v5289_v52 = vpop.f32.mrf.mxu1  ;;  %v5311_v15 = vpop.f32.mrf.mxu0 }
 0x8a7   : > { %v5290_v16 = vadd.f32 %v5289_v52, %v5288_v62  ;;  %v5312_v17 = vadd.f32 %v5311_v15, %v5310_v63  ;;  %v5225_v52 = vld [vmem:[%s6487_s13] ss:$0 sm:$0xff] }
 0x8a8   : > { %v5291_v18 = vpop.f32.mrf.mxu1  ;;  %v5313_v20 = vpop.f32.mrf.mxu0 }
 0x8a9   : > { %v4400_v21 = vadd.f32 %v5290_v16, %v5096_v14  ;;  %v5226_v16 = vld [vmem:[%s6488_s14] ss:$0 sm:$0xff] }
 0x8aa   : > { %v5292_v58 = vpop.f32.mrf.mxu1  ;;  %v5314_v23 = vpop.f32.mrf.mxu0 }
 0x8ab   : > { %v4440_v24 = vadd.f32 %v5312_v17, %v4400_v21 }
 0x8c4   : > { %v5332_v25 = vpop.f32.mrf.mxu1  ;;  %v5354_v26 = vpop.f32.mrf.mxu0 }
 0x8c6   : > { %v5333_v27 = vpop.f32.mrf.mxu1  ;;  %v5355_v29 = vpop.f32.mrf.mxu0 }
 0x8c7   : > { %v5334_v0 = vadd.f32 %v5333_v27, %v5332_v25  ;;  %v5356_v50 = vadd.f32 %v5355_v29, %v5354_v26 }
 0x8c8   : > { %v5335_v33 = vpop.f32.mrf.mxu1  ;;  %v5357_v6 = vpop.f32.mrf.mxu0 }
 0x8c9   : > { %v4480_v49 = vadd.f32 %v5334_v0, %v4440_v24 }
 0x8ca   : > { %v5336_v34 = vpop.f32.mrf.mxu1  ;;  %v5358_v35 = vpop.f32.mrf.mxu0 }
 0x8cb   : > { %v4520_v57 = vadd.f32 %v5356_v50, %v4480_v49 }
 0x8e4   : > { %v5376_v36 = vpop.f32.mrf.mxu1  ;;  %v5398_v37 = vpop.f32.mrf.mxu0 }
 0x8e6   : > { %v5377_v38 = vpop.f32.mrf.mxu1  ;;  %v5399_v39 = vpop.f32.mrf.mxu0 }
 0x8e7   : > { %v5378_v56 = vadd.f32 %v5377_v38, %v5376_v36  ;;  %v5400_v1 = vadd.f32 %v5399_v39, %v5398_v37 }
 0x8e8   : > { %v5379_v43 = vpop.f32.mrf.mxu1  ;;  %v5401_v44 = vpop.f32.mrf.mxu0 }
 0x8e9   : > { %v4560_v59 = vadd.f32 %v5378_v56, %v4520_v57 }
 0x8ea   : > { %v5380_v47 = vpop.f32.mrf.mxu1  ;;  %v5402_v19 = vpop.f32.mrf.mxu0 }
 0x8eb   : > { %v4600_v40 = vadd.f32 %v5400_v1, %v4560_v59 }
 0x904   : > { %v5420_v60 = vpop.f32.mrf.mxu1  ;;  %v5442_v61 = vpop.f32.mrf.mxu0 }
 0x906   : > { %v5421_v2 = vpop.f32.mrf.mxu1  ;;  %v5443_v3 = vpop.f32.mrf.mxu0 }
 0x907   : > { %v5422_v4 = vadd.f32 %v5421_v2, %v5420_v60  ;;  %v5444_v53 = vadd.f32 %v5443_v3, %v5442_v61 }
 0x908   : > { %v5423_v30 = vpop.f32.mrf.mxu1  ;;  %v5445_v42 = vpop.f32.mrf.mxu0 }
 0x909   : > { %v4640_v51 = vadd.f32 %v5422_v4, %v4600_v40 }
 0x90a   : > { %v5424_v41 = vpop.f32.mrf.mxu1  ;;  %v5446_v7 = vpop.f32.mrf.mxu0 }
 0x90b   : > { %v4680_v45 = vadd.f32 %v5444_v53, %v4640_v51 }
 0x90d   : > { %v4685_v28 = vadd.f32 %v4680_v45, %v6342_v5  ;;  %v5771_v5 = vld [vmem:[%s6489_s15 + $0x28] sm:$0xff]  }
 0x90e   : > { %5546 = vmatpush3.bf16.msra.mxu1 %v5771_v5 }
 0x90f   : > { %4688 = vadd.xlane.f32.xlu0 %v4685_v28  ;;  %5547 = vmatprep.subr.bf16.mxu1 %v5871_v22 }
 0x912   : > { %5548 = vmatpush3.bf16.msra.mxu1 %v5772_v54 }
 0x913   : > { %5549 = vmatprep.subr.bf16.mxu1 %v5871_v22 }
 0x916   : > { %5550 = vmatpush3.bf16.msra.mxu1 %v5773_v55 }
 0x917   : > { %5551 = vmatprep.subr.bf16.mxu1 %v5871_v22 }
 0x91a   : > { %5552 = vmatpush3.bf16.msra.mxu1 %v5774_v31 }
 0x91b   : > { %5553 = vmatprep.subr.bf16.mxu1 %v5871_v22 }
 0x91e   : > { %5554 = vmatpush3.bf16.msra.mxu1 %v5775_v11 }
 0x91f   : > { %5555 = vmatprep.subr.bf16.mxu1 %v5871_v22  ;;  %v5227_v22 = vld [vmem:[%s6490_s16] ss:$0 sm:$0xff] }
 0x922   : > { %5556 = vmatpush3.bf16.msra.mxu1 %v5776_v12 }
 0x998   : > { %v4689_v48 = vpop.xlane.xlu0 %4688 }
 0x999   : > { %v4690_v9 = vmul.f32 0.0078125, %v4689_v48 }
 0x99b   : > { %v4691_v32 = vsub.f32 %v4685_v28, %v4690_v9 }
 0x99d   : > { %v4692_v10 = vmul.f32 %v4691_v32, %v4691_v32 }
 0x99f   : > { %4693 = vadd.xlane.f32.xlu0 %v4692_v10 }
 0xa28   : > { %v4694_v13 = vpop.xlane.xlu0 %4693 }
 0xa29   : > { %v4695_v62 = vmul.f32 0.0078125, %v4694_v13 }
 0xa2b   : > { %v4696_v63 = vadd.f32 1e-05, %v4695_v62 }
 0xa2d   : > { %5795 = vrsqrt.f32 %v4696_v63 }
 0xa3a   : > { %v5796_v14 = vpop.eup %5795 }
 0xa3b   : > { %v4698_v15 = vmul.f32 %v5796_v14, %v4691_v32 }
 0xa3d   : > { %v4705_v17 = vmul.f32 %v5225_v52, %v4698_v15 }
 0xa3f   : > { %v4712_v18 = vadd.f32 %v5226_v16, %v4705_v17 }
 0xa41   : > { %v4713_v20 = vpack.c.bf16 %v4712_v18, %v4712_v18 }
 0xa43   : > { %5558 = vmatmul.mubr.bf16.vlgmr.msra.gmra.mxu1 %v4713_v20 }
 0xb03   : > { %v4819_v21 = vpop.f32.mrf.mxu1 }
 0xb04   : > { %v4820_v58 = vadd.f32 %v5227_v22, %v4819_v21 }
 0xb05   : > { %v5559_v23 = vpop.f32.mrf.mxu1 }
 0xb06   : > { %4826 = vst.msk [vmem:[%s573_s0] sm:$0xff] %vm4825_vm6, %v4820_v58 }
 0xb07   : > { %v4822_v24 = vpop.f32.mrf.mxu1 }
 0xb09   : > { %v5560_v25 = vpop.f32.mrf.mxu1 }
 0xb0a PF: > { %s29_s24 = sadd.s32 1, %s5863_s24  }
 0xb0b   : > { %p26_p3 = scmp.ge.s32.totalorder %s29_s24, 4  }
 0xb0d   :  { %28 = sbr.rel (!%p26_p3) target bundleno = 6 (0x6), region = 127 }
 0xb12   :  { %4846 = vsyncpa [#allocation3], 1 }
 0xb13   :  { %4848 = vsyncpa [#allocation3 + $0x1], 1 }
 0xb14   :  { %4849 = vsyncpa [#allocation5], 1 }

</bundles_post_ra>
